<compile_context>
chip_gen: v7x
topology: tpu7x:2x2x1
jax: 0.10.0
libtpu: 0.0.40
codegen_flags: <defaults>
</compile_context>

<pallas_src>
import jax
import jax.numpy as jnp
from jax.experimental import pallas as pl
from jax.experimental.pallas import tpu as pltpu

NSAMPLE = 32
RADIUS = 0.2


# ---------------------------------------------------------------------------
# Fused Pallas kernel: sa1 (conv1x1+BN+ReLU+max over S) -> sa2 (conv1x1+BN+ReLU+max over G)
# One grid step; B folded into the matmul M dimension.
# ---------------------------------------------------------------------------
def _sa_fused_kernel(x_ref, xyz_ref, w1_ref, b1_ref, w2x_ref, w2f_ref, b2_ref, o_ref):
    # x_ref   : (B*G*S, C1) f32   grouped [xyz_norm | feats] (cast to bf16 in VMEM)
    # xyz_ref : (B*G, 3)    f32   sa1 centroids (sa2's xyz channels)
    # w1_ref  : (C1, D1)    bf16  sa1 conv weight with BN scale folded in
    # b1_ref  : (1, D1)     f32   sa1 folded bias (conv bias + BN shift)
    # w2x_ref : (3, D2)     f32   sa2 weight rows multiplying xyz (used via VPU FMAs)
    # w2f_ref : (D1, D2)    bf16  sa2 weight rows multiplying l1 features
    # b2_ref  : (1, D2)     f32   sa2 folded bias
    # o_ref   : (B, D2)     f32   final pooled features (lane-dense, 128 lanes/row)
    BGS, _ = x_ref.shape
    BG = xyz_ref.shape[0]
    S = BGS // BG
    D1 = w1_ref.shape[1]
    B, D2 = o_ref.shape
    G = BG // B

    # ---- sa1: one MXU pass (f32 acc) + f32 bias + ReLU + max over samples ----
    x = x_ref[...].astype(jnp.bfloat16)                                # VPU cast in VMEM
    y1 = jnp.dot(x, w1_ref[...], preferred_element_type=jnp.float32)   # (B*G*S, D1) f32
    y1 = jnp.maximum(y1 + b1_ref[...], 0.0)
    # sublane split at S (multiple of 8): free view; max over S is an XLU reduce
    l1 = jnp.max(y1.reshape(BG, S, D1), axis=1)                        # (B*G, D1) f32

    # ---- sa2 (group_all): one MXU pass for l1; xyz part as 3 VPU broadcast-FMAs ----
    y2 = jnp.dot(l1.astype(jnp.bfloat16), w2f_ref[...],
                 preferred_element_type=jnp.float32)                   # (B*G, D2) f32
    xyz = xyz_ref[...]                                                 # (B*G, 3) f32
    w2x = w2x_ref[...]                                                 # (3, D2)  f32
    y2 = (y2
          + xyz[:, 0:1] * w2x[0:1, :]
          + xyz[:, 1:2] * w2x[1:2, :]
          + xyz[:, 2:3] * w2x[2:3, :])
    y2 = jnp.maximum(y2 + b2_ref[...], 0.0)
    # sublane split at G (multiple of 8): free view; max over npoint per batch
    o_ref[...] = jnp.max(y2.reshape(B, G, D2), axis=1)                 # (B, D2)


def sa_fused(new_points, new_xyz, p):
    """new_points: [B, G, S, C1] f32, new_xyz: [B, G, 3] f32 -> [B, D2] f32."""
    B, G, S, C1 = new_points.shape
    D1 = p["w1"].shape[1]
    D2 = p["w2_feat"].shape[1]

    # contiguous reshapes only (no dtype change): zero-cost in XLA
    x = new_points.reshape(B * G * S, C1)
    xyz = new_xyz.reshape(B * G, 3)

    out = pl.pallas_call(
        _sa_fused_kernel,
        out_shape=jax.ShapeDtypeStruct((B, D2), jnp.float32),
        grid=(1,),
        in_specs=[
            pl.BlockSpec((B * G * S, C1), lambda i: (0, 0)),
            pl.BlockSpec((B * G, 3), lambda i: (0, 0)),
            pl.BlockSpec((C1, D1), lambda i: (0, 0)),
            pl.BlockSpec((1, D1), lambda i: (0, 0)),
            pl.BlockSpec((3, D2), lambda i: (0, 0)),
            pl.BlockSpec((D1, D2), lambda i: (0, 0)),
            pl.BlockSpec((1, D2), lambda i: (0, 0)),
        ],
        out_specs=pl.BlockSpec((B, D2), lambda i: (0, 0)),
        compiler_params=pltpu.CompilerParams(dimension_semantics=("arbitrary",)),
    )(x, xyz, p["w1"], p["b1"], p["w2_xyz"], p["w2_feat"], p["b2"])
    return out


# ---------------------------------------------------------------------------
# Plain-JAX glue: farthest point sampling / ball query / gather (data-dependent)
# ---------------------------------------------------------------------------
def index_points(points, idx):
    # points: [B, N, C]; idx: [B, ...] int -> [B, ..., C]
    return jax.vmap(lambda p, i: p[i])(points, idx)


def square_distance(src, dst):
    # src: [B, S, 3], dst: [B, N, 3] -> [B, S, N]
    return jnp.sum((src[:, :, None, :] - dst[:, None, :, :]) ** 2, axis=-1)


def farthest_point_sample(xyz, npoint):
    # TODO(synk): torch version picks a random initial farthest point (torch.randint);
    # fixed to index 0 here for determinism.
    B, N, _ = xyz.shape
    centroids0 = jnp.zeros((B, npoint), dtype=jnp.int32)
    distance0 = jnp.full((B, N), 1e10, dtype=jnp.float32)
    farthest0 = jnp.zeros((B,), dtype=jnp.int32)

    def body(i, state):
        centroids, distance, farthest = state
        centroids = centroids.at[:, i].set(farthest)
        centroid = jax.vmap(lambda p, f: p[f])(xyz, farthest)[:, None, :]   # [B,1,3]
        dist = jnp.sum((xyz - centroid) ** 2, axis=-1)                      # [B,N]
        distance = jnp.minimum(distance, dist)
        farthest = jnp.argmax(distance, axis=-1).astype(jnp.int32)
        return centroids, distance, farthest

    centroids, _, _ = jax.lax.fori_loop(
        0, npoint, body, (centroids0, distance0, farthest0))
    return centroids


def query_ball_point(radius, nsample, xyz, new_xyz):
    # Same semantics as the torch reference (first `nsample` in-radius indices in
    # ascending index order, padded with the first one), using lax.top_k (O(N*k))
    # instead of a full jnp.sort over N.
    B, N, _ = xyz.shape
    S = new_xyz.shape[1]
    sqrdists = square_distance(new_xyz, xyz)                                # [B,S,N]
    idx = jnp.broadcast_to(jnp.arange(N, dtype=jnp.int32), (B, S, N))
    idx = jnp.where(sqrdists > radius ** 2, N, idx)
    neg_topk, _ = jax.lax.top_k(-idx, nsample)          # k smallest indices, ascending
    group_idx = -neg_topk                                                   # [B,S,ns]
    group_first = group_idx[:, :, :1]
    group_idx = jnp.where(group_idx == N, group_first, group_idx)
    return group_idx


# ---------------------------------------------------------------------------
# PointNet2 forward (matches the torch module with action_space=None,
# dims=(C_in, 32, 64, 128) -> sa1 mlp=[64], sa2 mlp=[128])
# ---------------------------------------------------------------------------
def pointnet2_forward(x, folded_params):
    # x: [B, C_in, N]  (torch channels-first pointcloud)
    B, c_in, N = x.shape
    xyz = jnp.transpose(x[:, :3, :], (0, 2, 1))            # [B, N, 3]
    feats = jnp.transpose(x[:, 3:, :], (0, 2, 1))          # [B, N, C_in-3]

    # ---- sa1: sample_and_group (plain JAX; data-dependent) ----
    npoint = N // 4
    fps_idx = farthest_point_sample(xyz, npoint)           # [B, npoint]
    new_xyz = index_points(xyz, fps_idx)                   # [B, npoint, 3]
    idx = query_ball_point(RADIUS, NSAMPLE, xyz, new_xyz)  # [B, npoint, nsample]
    grouped_xyz = index_points(xyz, idx)                   # [B, npoint, ns, 3]
    grouped_xyz_norm = grouped_xyz - new_xyz[:, :, None, :]
    grouped_feats = index_points(feats, idx)               # [B, npoint, ns, C_in-3]
    new_points = jnp.concatenate([grouped_xyz_norm, grouped_feats], axis=-1)

    # ---- fused sa1 + sa2 hot path (single Pallas kernel, single grid step) ----
    return sa_fused(new_points, new_xyz, folded_params)    # [B, 128]


# ---------------------------------------------------------------------------
# Parameters: raw conv/BN params (torch-like), folded into kernel params
# ---------------------------------------------------------------------------
def init_raw_params(key, c_in, d1=64, d2=128):
    ks = jax.random.split(key, 8)
    c2 = d1 + 3
    return dict(
        # sa1: Conv2d(c_in, d1, 1) + BatchNorm2d(d1)   (weights stored as [C, D])
        w1=jax.random.normal(ks[0], (c_in, d1), jnp.float32) * 0.1,
        b1=jax.random.normal(ks[1], (d1,), jnp.float32) * 0.05,
        gamma1=1.0 + 0.05 * jax.random.normal(ks[2], (d1,), jnp.float32),
        beta1=0.05 * jax.random.normal(ks[3], (d1,), jnp.float32),
        mean1=jnp.zeros((d1,), jnp.float32),
        var1=jnp.ones((d1,), jnp.float32),
        # sa2: Conv2d(d1 + 3, d2, 1) + BatchNorm2d(d2)
        w2=jax.random.normal(ks[4], (c2, d2), jnp.float32) * 0.1,
        b2=jax.random.normal(ks[5], (d2,), jnp.float32) * 0.05,
        gamma2=1.0 + 0.05 * jax.random.normal(ks[6], (d2,), jnp.float32),
        beta2=0.05 * jax.random.normal(ks[7], (d2,), jnp.float32),
        mean2=jnp.zeros((d2,), jnp.float32),
        var2=jnp.ones((d2,), jnp.float32),
    )


def fold_params(raw, eps=1e-5):
    """Fold conv bias + BN (eval mode) into weights/bias; cast MXU weights to bf16."""
    s1 = raw["gamma1"] / jnp.sqrt(raw["var1"] + eps)
    w1 = (raw["w1"] * s1[None, :]).astype(jnp.bfloat16)                 # (C1, D1)
    b1 = ((raw["b1"] - raw["mean1"]) * s1 + raw["beta1"])[None, :]      # (1, D1) f32
    s2 = raw["gamma2"] / jnp.sqrt(raw["var2"] + eps)
    w2 = raw["w2"] * s2[None, :]                                        # (3+D1, D2)
    b2 = ((raw["b2"] - raw["mean2"]) * s2 + raw["beta2"])[None, :]      # (1, D2) f32
    return dict(
        w1=w1, b1=b1.astype(jnp.float32),
        # concat order in sa2 input: xyz channels first, then l1 features
        w2_xyz=w2[:3].astype(jnp.float32),       # stays f32: applied as VPU FMAs
        w2_feat=w2[3:].astype(jnp.bfloat16),     # MXU operand
        b2=b2.astype(jnp.float32),
    )


if __name__ == "__main__":
    key = jax.random.PRNGKey(0)
    B, C_IN, N = 2, 6, 64          # obs_space.shape = (6, 64); action_space = None
    k_xyz, k_feat, k_p = jax.random.split(key, 3)
    xyz_in = jax.random.uniform(k_xyz, (B, 3, N), dtype=jnp.float32)
    feat_in = jax.random.normal(k_feat, (B, C_IN - 3, N), dtype=jnp.float32)
    x = jnp.concatenate([xyz_in, feat_in], axis=1)      # [B, C_IN, N]

    raw = init_raw_params(k_p, c_in=C_IN)
    params = fold_params(raw)
    fwd = jax.jit(lambda inp: pointnet2_forward(inp, params))
    out = jax.block_until_ready(fwd(x))

    assert out.shape == (B, 128), out.shape
    assert bool(jnp.all(jnp.isfinite(out)))
    print("KERNEL_OK")
</pallas_src>

<mosaic_0001>
module attributes {stable_mosaic.version = 11 : i64} {
  func.func @_sa_fused_kernel(%arg0: i32, %arg1: memref<1024x6xf32, #tpu.memory_space<vmem>>, %arg2: memref<32x3xf32, #tpu.memory_space<vmem>>, %arg3: memref<6x64xbf16, #tpu.memory_space<vmem>>, %arg4: memref<1x64xf32, #tpu.memory_space<vmem>>, %arg5: memref<3x128xf32, #tpu.memory_space<vmem>>, %arg6: memref<64x128xbf16, #tpu.memory_space<vmem>>, %arg7: memref<1x128xf32, #tpu.memory_space<vmem>>, %arg8: memref<2x128xf32, #tpu.memory_space<vmem>>) attributes {dimension_semantics = [#tpu.dimension_semantics<arbitrary>], iteration_bounds = array<i64: 1>, scalar_prefetch = 0 : i64, scratch_operands = 0 : i64, tpu.core_type = #tpu.core_type<tc>, window_params = [{pipeline_mode = #tpu.pipeline_mode<synchronous>, transform_indices = @transform_0, window_bounds = array<i64: 1024, 6>}, {pipeline_mode = #tpu.pipeline_mode<synchronous>, transform_indices = @transform_1, window_bounds = array<i64: 32, 3>}, {pipeline_mode = #tpu.pipeline_mode<synchronous>, transform_indices = @transform_2, window_bounds = array<i64: 6, 64>}, {pipeline_mode = #tpu.pipeline_mode<synchronous>, transform_indices = @transform_3, window_bounds = array<i64: 1, 64>}, {pipeline_mode = #tpu.pipeline_mode<synchronous>, transform_indices = @transform_4, window_bounds = array<i64: 3, 128>}, {pipeline_mode = #tpu.pipeline_mode<synchronous>, transform_indices = @transform_5, window_bounds = array<i64: 64, 128>}, {pipeline_mode = #tpu.pipeline_mode<synchronous>, transform_indices = @transform_6, window_bounds = array<i64: 1, 128>}, {pipeline_mode = #tpu.pipeline_mode<synchronous>, transform_indices = @transform_7, window_bounds = array<i64: 2, 128>}]} {
    %c0 = arith.constant 0 : index
    %c0_0 = arith.constant 0 : index
    %0 = vector.load %arg1[%c0, %c0_0] : memref<1024x6xf32, #tpu.memory_space<vmem>>, vector<1024x6xf32>
    %1 = arith.truncf %0 : vector<1024x6xf32> to vector<1024x6xbf16>
    %c0_1 = arith.constant 0 : index
    %c0_2 = arith.constant 0 : index
    %2 = vector.load %arg3[%c0_1, %c0_2] : memref<6x64xbf16, #tpu.memory_space<vmem>>, vector<6x64xbf16>
    %cst = arith.constant dense<0.000000e+00> : vector<1024x64xf32>
    %3 = tpu.matmul %1, %2, %cst {dimension_numbers = #tpu.dot_dimension_numbers<[1], [0], [0], [1], [0, 0, 1, 1], [], []>} : vector<1024x6xbf16>, vector<6x64xbf16>, vector<1024x64xf32> -> vector<1024x64xf32>
    %c0_3 = arith.constant 0 : index
    %c0_4 = arith.constant 0 : index
    %4 = vector.load %arg4[%c0_3, %c0_4] : memref<1x64xf32, #tpu.memory_space<vmem>>, vector<1x64xf32>
    %5 = vector.broadcast %4 : vector<1x64xf32> to vector<1024x64xf32>
    %6 = arith.addf %3, %5 : vector<1024x64xf32>
    %cst_5 = arith.constant 0.000000e+00 : f32
    %7 = vector.broadcast %cst_5 : f32 to vector<1024x64xf32>
    %8 = arith.maximumf %6, %7 : vector<1024x64xf32>
    %9 = vector.shape_cast %8 : vector<1024x64xf32> to vector<32x32x64xf32>
    %cst_6 = arith.constant dense<0xFF800000> : vector<32x64xf32>
    %10 = vector.multi_reduction <maximumf>, %9, %cst_6 [1] : vector<32x32x64xf32> to vector<32x64xf32>
    %11 = arith.truncf %10 : vector<32x64xf32> to vector<32x64xbf16>
    %c0_7 = arith.constant 0 : index
    %c0_8 = arith.constant 0 : index
    %12 = vector.load %arg6[%c0_7, %c0_8] : memref<64x128xbf16, #tpu.memory_space<vmem>>, vector<64x128xbf16>
    %cst_9 = arith.constant dense<0.000000e+00> : vector<32x128xf32>
    %13 = tpu.matmul %11, %12, %cst_9 {dimension_numbers = #tpu.dot_dimension_numbers<[1], [0], [0], [1], [0, 0, 1, 1], [], []>} : vector<32x64xbf16>, vector<64x128xbf16>, vector<32x128xf32> -> vector<32x128xf32>
    %c0_10 = arith.constant 0 : index
    %c0_11 = arith.constant 0 : index
    %14 = vector.load %arg2[%c0_10, %c0_11] : memref<32x3xf32, #tpu.memory_space<vmem>>, vector<32x3xf32>
    %c0_12 = arith.constant 0 : index
    %c0_13 = arith.constant 0 : index
    %15 = vector.load %arg5[%c0_12, %c0_13] : memref<3x128xf32, #tpu.memory_space<vmem>>, vector<3x128xf32>
    %16 = vector.extract_strided_slice %14 {offsets = [0, 0], sizes = [32, 1], strides = [1, 1]} : vector<32x3xf32> to vector<32x1xf32>
    %17 = vector.extract_strided_slice %15 {offsets = [0, 0], sizes = [1, 128], strides = [1, 1]} : vector<3x128xf32> to vector<1x128xf32>
    %18 = vector.broadcast %16 : vector<32x1xf32> to vector<32x128xf32>
    %19 = vector.broadcast %17 : vector<1x128xf32> to vector<32x128xf32>
    %20 = arith.mulf %18, %19 : vector<32x128xf32>
    %21 = arith.addf %13, %20 : vector<32x128xf32>
    %22 = vector.extract_strided_slice %14 {offsets = [0, 1], sizes = [32, 1], strides = [1, 1]} : vector<32x3xf32> to vector<32x1xf32>
    %23 = vector.extract_strided_slice %15 {offsets = [1, 0], sizes = [1, 128], strides = [1, 1]} : vector<3x128xf32> to vector<1x128xf32>
    %24 = vector.broadcast %22 : vector<32x1xf32> to vector<32x128xf32>
    %25 = vector.broadcast %23 : vector<1x128xf32> to vector<32x128xf32>
    %26 = arith.mulf %24, %25 : vector<32x128xf32>
    %27 = arith.addf %21, %26 : vector<32x128xf32>
    %28 = vector.extract_strided_slice %14 {offsets = [0, 2], sizes = [32, 1], strides = [1, 1]} : vector<32x3xf32> to vector<32x1xf32>
    %29 = vector.extract_strided_slice %15 {offsets = [2, 0], sizes = [1, 128], strides = [1, 1]} : vector<3x128xf32> to vector<1x128xf32>
    %30 = vector.broadcast %28 : vector<32x1xf32> to vector<32x128xf32>
    %31 = vector.broadcast %29 : vector<1x128xf32> to vector<32x128xf32>
    %32 = arith.mulf %30, %31 : vector<32x128xf32>
    %33 = arith.addf %27, %32 : vector<32x128xf32>
    %c0_14 = arith.constant 0 : index
    %c0_15 = arith.constant 0 : index
    %34 = vector.load %arg7[%c0_14, %c0_15] : memref<1x128xf32, #tpu.memory_space<vmem>>, vector<1x128xf32>
    %35 = vector.broadcast %34 : vector<1x128xf32> to vector<32x128xf32>
    %36 = arith.addf %33, %35 : vector<32x128xf32>
    %cst_16 = arith.constant 0.000000e+00 : f32
    %37 = vector.broadcast %cst_16 : f32 to vector<32x128xf32>
    %38 = arith.maximumf %36, %37 : vector<32x128xf32>
    %39 = vector.shape_cast %38 : vector<32x128xf32> to vector<2x16x128xf32>
    %cst_17 = arith.constant dense<0xFF800000> : vector<2x128xf32>
    %40 = vector.multi_reduction <maximumf>, %39, %cst_17 [1] : vector<2x16x128xf32> to vector<2x128xf32>
    %c0_18 = arith.constant 0 : index
    %c0_19 = arith.constant 0 : index
    %41 = vector.load %arg8[%c0_18, %c0_19] : memref<2x128xf32, #tpu.memory_space<vmem>>, vector<2x128xf32>
    tpu.vector_store %arg8[%c0_18, %c0_19], %40 {strides = array<i32>} : memref<2x128xf32, #tpu.memory_space<vmem>>, vector<2x128xf32>,
    return
  }
  func.func @transform_0(%arg0: i32) -> (i32, i32) {
    %c0_i32 = arith.constant 0 : i32
    %c0_i32_0 = arith.constant 0 : i32
    %c0_i32_1 = arith.constant 0 : i32
    return %c0_i32, %c0_i32_0 : i32, i32
  }
  func.func @transform_1(%arg0: i32) -> (i32, i32) {
    %c0_i32 = arith.constant 0 : i32
    %c0_i32_0 = arith.constant 0 : i32
    %c0_i32_1 = arith.constant 0 : i32
    return %c0_i32, %c0_i32_0 : i32, i32
  }
  func.func @transform_2(%arg0: i32) -> (i32, i32) {
    %c0_i32 = arith.constant 0 : i32
    %c0_i32_0 = arith.constant 0 : i32
    %c0_i32_1 = arith.constant 0 : i32
    return %c0_i32, %c0_i32_0 : i32, i32
  }
  func.func @transform_3(%arg0: i32) -> (i32, i32) {
    %c0_i32 = arith.constant 0 : i32
    %c0_i32_0 = arith.constant 0 : i32
    %c0_i32_1 = arith.constant 0 : i32
    return %c0_i32, %c0_i32_0 : i32, i32
  }
  func.func @transform_4(%arg0: i32) -> (i32, i32) {
    %c0_i32 = arith.constant 0 : i32
    %c0_i32_0 = arith.constant 0 : i32
    %c0_i32_1 = arith.constant 0 : i32
    return %c0_i32, %c0_i32_0 : i32, i32
  }
  func.func @transform_5(%arg0: i32) -> (i32, i32) {
    %c0_i32 = arith.constant 0 : i32
    %c0_i32_0 = arith.constant 0 : i32
    %c0_i32_1 = arith.constant 0 : i32
    return %c0_i32, %c0_i32_0 : i32, i32
  }
  func.func @transform_6(%arg0: i32) -> (i32, i32) {
    %c0_i32 = arith.constant 0 : i32
    %c0_i32_0 = arith.constant 0 : i32
    %c0_i32_1 = arith.constant 0 : i32
    return %c0_i32, %c0_i32_0 : i32, i32
  }
  func.func @transform_7(%arg0: i32) -> (i32, i32) {
    %c0_i32 = arith.constant 0 : i32
    %c0_i32_0 = arith.constant 0 : i32
    %c0_i32_1 = arith.constant 0 : i32
    return %c0_i32, %c0_i32_0 : i32, i32
  }
}

</mosaic_0001>

<bundles_post_ra>
// kernel: custom-call.8
= control target key start
LH: loop header
LB: loop body
LE: loop exit
PB: predicated region body
PF: predicated region fallthrough
CT: control target
= control target key end

     0   :  { %s6_s0 = inlined_call_operand.vmem [shape: f32[2,64], index: 0, kind: output, shape index: {}]  }

// kernel: _lambda_.1
= control target key start
LH: loop header
LB: loop body
LE: loop exit
PB: predicated region body
PF: predicated region fallthrough
CT: control target
= control target key end

     0   :  { %vm421_vm0 = vcmask 1042432   ;;  %vm228_vm1 = vcmask 48128   ;;  %s3434_s0 = inlined_call_operand.vmem [shape: f32[1024,6], index: 0, kind: input, shape index: {}]   ;;  %s3435_s1 = inlined_call_operand.vmem [shape: f32[32,3], index: 1, kind: input, shape index: {}]   ;;  %s3436_s2 = inlined_call_operand.vmem [shape: bf16[6,64], index: 2, kind: input, shape index: {}]   ;;  %s3437_s3 = inlined_call_operand.vmem [shape: f32[1,64], index: 3, kind: input, shape index: {}]   ;;  %s3438_s4 = inlined_call_operand.vmem [shape: f32[3,128], index: 4, kind: input, shape index: {}]   ;;  %s3439_s5 = inlined_call_operand.vmem [shape: bf16[64,128], index: 5, kind: input, shape index: {}]   ;;  %s3440_s6 = inlined_call_operand.vmem [shape: f32[1,128], index: 6, kind: input, shape index: {}]   ;;  %s3441_s7 = inlined_call_operand.hbm [shape: f32[2,128], index: 7, kind: output, shape index: {}]  }
   0x1   :  { %v220_v0 = vld [vmem:[%s3436_s2] sm:$0x7]  ;;  %v29_v2 = vld [vmem:[%s3434_s0 + $0x8] sm:$0xff]  ;;  %v30_v7 = vld [vmem:[%s3434_s0 + $0x10] sm:$0xff] }
   0x2   :  { %v28_v1 = vld [vmem:[%s3434_s0] sm:$0xff]  ;;  %2159 = vmatprep.subr.msk.bf16.mxu0 %vm421_vm0, %v220_v0  ;;  %2160 = vmatprep.subr.msk.bf16.mxu1 %vm421_vm0, %v220_v0  ;;  %v423_v3 = vsel %vm421_vm0, %v220_v0, 0  ;;  %v97_v6 = vld [vmem:[%s3434_s0 + $0x228] sm:$0xff]  ;;  %v31_v9 = vld [vmem:[%s3434_s0 + $0x18] sm:$0xff] }
   0x3   :  { %v156_v4 = vpack.c.bf16 %v29_v2, %v28_v1  ;;  %v96_v5 = vld [vmem:[%s3434_s0 + $0x220] sm:$0xff]  ;;  %2016 = vmatpush3.bf16.msra.mxu0 %v423_v3  ;;  %2158 = vmatpush3.bf16.msra.mxu1 %v423_v3  ;;  %v98_v10 = vld [vmem:[%s3434_s0 + $0x230] sm:$0xff]  ;;  %v99_v11 = vld [vmem:[%s3434_s0 + $0x238] sm:$0xff]  ;;  %v157_v12 = vpack.c.bf16 %v31_v9, %v30_v7 }
   0x4   :  { %v190_v8 = vpack.c.bf16 %v97_v6, %v96_v5  ;;  %v191_v13 = vpack.c.bf16 %v99_v11, %v98_v10  ;;  %v32_v14 = vld [vmem:[%s3434_s0 + $0x20] sm:$0xff]  ;;  %v33_v15 = vld [vmem:[%s3434_s0 + $0x28] sm:$0xff]  ;;  %v34_v20 = vld [vmem:[%s3434_s0 + $0x30] sm:$0xff] }
   0x5   :  { %2017 = vmatprep.mubr.msk.bf16.mxu0 %vm228_vm1, %v156_v4  ;;  %v100_v16 = vld [vmem:[%s3434_s0 + $0x240] sm:$0xff]  ;;  %v158_v17 = vpack.c.bf16 %v33_v15, %v32_v14  ;;  %v101_v18 = vld [vmem:[%s3434_s0 + $0x248] sm:$0xff]  ;;  %v35_v21 = vld [vmem:[%s3434_s0 + $0x38] sm:$0xff] }
   0x6   :  { %2085 = vmatprep.mubr.msk.bf16.mxu1 %vm228_vm1, %v190_v8  ;;  %2018 = vmatmul.mubr.msk.bf16.vlgmr.msra.gmra.mrb[0].mxu0 %vm228_vm1, %v157_v12  ;;  %v192_v19 = vpack.c.bf16 %v101_v18, %v100_v16  ;;  %v102_v22 = vld [vmem:[%s3434_s0 + $0x250] sm:$0xff]  ;;  %v103_v23 = vld [vmem:[%s3434_s0 + $0x258] sm:$0xff]  ;;  %v36_v24 = vld [vmem:[%s3434_s0 + $0x40] sm:$0xff]  ;;  %v159_v28 = vpack.c.bf16 %v35_v21, %v34_v20 }
   0x7   :  { %2086 = vmatmul.mubr.msk.bf16.vlgmr.msra.gmra.mrb[0].mxu1 %vm228_vm1, %v191_v13  ;;  %2021 = vmatprep.mubr.msk.bf16.mxu0 %vm228_vm1, %v158_v17  ;;  %v37_v25 = vld [vmem:[%s3434_s0 + $0x48] sm:$0xff]  ;;  %v104_v26 = vld [vmem:[%s3434_s0 + $0x260] sm:$0xff]  ;;  %v193_v29 = vpack.c.bf16 %v103_v23, %v102_v22  ;;  %v38_v32 = vld [vmem:[%s3434_s0 + $0x50] sm:$0xff] }
   0x8   :  { %2089 = vmatprep.mubr.msk.bf16.mxu1 %vm228_vm1, %v192_v19  ;;  %v105_v27 = vld [vmem:[%s3434_s0 + $0x268] sm:$0xff]  ;;  %v160_v30 = vpack.c.bf16 %v37_v25, %v36_v24  ;;  %v39_v33 = vld [vmem:[%s3434_s0 + $0x58] sm:$0xff]  ;;  %v106_v34 = vld [vmem:[%s3434_s0 + $0x270] sm:$0xff] }
   0x9   :  { %v194_v31 = vpack.c.bf16 %v105_v27, %v104_v26  ;;  %v107_v35 = vld [vmem:[%s3434_s0 + $0x278] sm:$0xff]  ;;  %v40_v36 = vld [vmem:[%s3434_s0 + $0x60] sm:$0xff]  ;;  %v41_v37 = vld [vmem:[%s3434_s0 + $0x68] sm:$0xff]  ;;  %v161_v40 = vpack.c.bf16 %v39_v33, %v38_v32 }
   0xa   :  { %v108_v38 = vld [vmem:[%s3434_s0 + $0x280] sm:$0xff]  ;;  %v109_v39 = vld [vmem:[%s3434_s0 + $0x288] sm:$0xff]  ;;  %v195_v41 = vpack.c.bf16 %v107_v35, %v106_v34  ;;  %v162_v42 = vpack.c.bf16 %v41_v37, %v40_v36  ;;  %v42_v44 = vld [vmem:[%s3434_s0 + $0x70] sm:$0xff] }
   0xb   :  { %v196_v43 = vpack.c.bf16 %v109_v39, %v108_v38  ;;  %v43_v45 = vld [vmem:[%s3434_s0 + $0x78] sm:$0xff]  ;;  %v110_v46 = vld [vmem:[%s3434_s0 + $0x290] sm:$0xff]  ;;  %v44_v48 = vld [vmem:[%s3434_s0 + $0x80] sm:$0xff] }
   0xc   :  { %v111_v47 = vld [vmem:[%s3434_s0 + $0x298] sm:$0xff]  ;;  %v45_v49 = vld [vmem:[%s3434_s0 + $0x88] sm:$0xff]  ;;  %v112_v50 = vld [vmem:[%s3434_s0 + $0x2a0] sm:$0xff]  ;;  %v163_v52 = vpack.c.bf16 %v43_v45, %v42_v44 }
   0xd   :  { %v113_v51 = vld [vmem:[%s3434_s0 + $0x2a8] sm:$0xff]  ;;  %v197_v53 = vpack.c.bf16 %v111_v47, %v110_v46  ;;  %v164_v54 = vpack.c.bf16 %v45_v49, %v44_v48  ;;  %v46_v56 = vld [vmem:[%s3434_s0 + $0x90] sm:$0xff]  ;;  %v47_v57 = vld [vmem:[%s3434_s0 + $0x98] sm:$0xff] }
   0xe   :  { %2022 = vmatmul.mubr.msk.bf16.gmra.mrb[4].mxu0 %vm228_vm1, %v159_v28  ;;  %v198_v55 = vpack.c.bf16 %v113_v51, %v112_v50  ;;  %v114_v58 = vld [vmem:[%s3434_s0 + $0x2b0] sm:$0xff]  ;;  %v115_v59 = vld [vmem:[%s3434_s0 + $0x2b8] sm:$0xff]  ;;  %v48_v60 = vld [vmem:[%s3434_s0 + $0xa0] sm:$0xff]  ;;  %v165_v0 = vpack.c.bf16 %v47_v57, %v46_v56 }
   0xf   :  { %2090 = vmatmul.mubr.msk.bf16.gmra.mrb[4].mxu1 %vm228_vm1, %v193_v29  ;;  %2025 = vmatprep.mubr.msk.bf16.mxu0 %vm228_vm1, %v160_v30  ;;  %v49_v61 = vld [vmem:[%s3434_s0 + $0xa8] sm:$0xff]  ;;  %v116_v62 = vld [vmem:[%s3434_s0 + $0x2c0] sm:$0xff]  ;;  %v199_v1 = vpack.c.bf16 %v115_v59, %v114_v58  ;;  %v50_v4 = vld [vmem:[%s3434_s0 + $0xb0] sm:$0xff] }
  0x10   :  { %2093 = vmatprep.mubr.msk.bf16.mxu1 %vm228_vm1, %v194_v31  ;;  %v117_v63 = vld [vmem:[%s3434_s0 + $0x2c8] sm:$0xff]  ;;  %v166_v2 = vpack.c.bf16 %v49_v61, %v48_v60  ;;  %v51_v5 = vld [vmem:[%s3434_s0 + $0xb8] sm:$0xff]  ;;  %v118_v6 = vld [vmem:[%s3434_s0 + $0x2d0] sm:$0xff] }
  0x11   :  { %v200_v3 = vpack.c.bf16 %v117_v63, %v116_v62  ;;  %v119_v7 = vld [vmem:[%s3434_s0 + $0x2d8] sm:$0xff]  ;;  %v52_v8 = vld [vmem:[%s3434_s0 + $0xc0] sm:$0xff]  ;;  %v53_v9 = vld [vmem:[%s3434_s0 + $0xc8] sm:$0xff]  ;;  %v167_v12 = vpack.c.bf16 %v51_v5, %v50_v4 }
  0x12   :  { %v120_v10 = vld [vmem:[%s3434_s0 + $0x2e0] sm:$0xff]  ;;  %v121_v11 = vld [vmem:[%s3434_s0 + $0x2e8] sm:$0xff]  ;;  %v201_v13 = vpack.c.bf16 %v119_v7, %v118_v6  ;;  %v168_v14 = vpack.c.bf16 %v53_v9, %v52_v8  ;;  %v54_v16 = vld [vmem:[%s3434_s0 + $0xd0] sm:$0xff] }
  0x13   :  { %v202_v15 = vpack.c.bf16 %v121_v11, %v120_v10  ;;  %v55_v17 = vld [vmem:[%s3434_s0 + $0xd8] sm:$0xff] }
  0x16   :  { %2026 = vmatmul.mubr.msk.bf16.gmra.mrb[8].mxu0 %vm228_vm1, %v161_v40 }
  0x17   :  { %2094 = vmatmul.mubr.msk.bf16.gmra.mrb[8].mxu1 %vm228_vm1, %v195_v41  ;;  %2029 = vmatprep.mubr.msk.bf16.mxu0 %vm228_vm1, %v162_v42 }
  0x18   :  { %2097 = vmatprep.mubr.msk.bf16.mxu1 %vm228_vm1, %v196_v43 }
  0x1e   :  { %2030 = vmatmul.mubr.msk.bf16.gmra.mrb[12].mxu0 %vm228_vm1, %v163_v52 }
  0x1f   :  { %2098 = vmatmul.mubr.msk.bf16.gmra.mrb[12].mxu1 %vm228_vm1, %v197_v53  ;;  %2033 = vmatprep.mubr.msk.bf16.mxu0 %vm228_vm1, %v164_v54 }
  0x20   :  { %2101 = vmatprep.mubr.msk.bf16.mxu1 %vm228_vm1, %v198_v55 }
  0x26   :  { %2034 = vmatmul.mubr.msk.bf16.gmra.mrb[16].mxu0 %vm228_vm1, %v165_v0 }
  0x27   :  { %2102 = vmatmul.mubr.msk.bf16.gmra.mrb[16].mxu1 %vm228_vm1, %v199_v1  ;;  %2037 = vmatprep.mubr.msk.bf16.mxu0 %vm228_vm1, %v166_v2 }
  0x28   :  { %2105 = vmatprep.mubr.msk.bf16.mxu1 %vm228_vm1, %v200_v3 }
  0x2e   :  { %2038 = vmatmul.mubr.msk.bf16.gmra.mrb[20].mxu0 %vm228_vm1, %v167_v12 }
  0x2f   :  { %2106 = vmatmul.mubr.msk.bf16.gmra.mrb[20].mxu1 %vm228_vm1, %v201_v13 }
  0x30   :  { %12 = vsyncpa [#allocation3], 0  ;;  %2041 = vmatprep.mubr.msk.bf16.mxu0 %vm228_vm1, %v168_v14  ;;  %2109 = vmatprep.mubr.msk.bf16.mxu1 %vm228_vm1, %v202_v15  ;;  %v122_v18 = vld [vmem:[%s3434_s0 + $0x2f0] sm:$0xff]  ;;  %v123_v19 = vld [vmem:[%s3434_s0 + $0x2f8] sm:$0xff]  ;;  %v169_v24 = vpack.c.bf16 %v55_v17, %v54_v16  ;;  %vm1098_vm2 = vcmask 523264   ;;  %vm1652_vm3 = vcmask 1041409  }
  0x31   :  { %v56_v20 = vld [vmem:[%s3434_s0 + $0xe0] sm:$0xff]  ;;  %v57_v21 = vld [vmem:[%s3434_s0 + $0xe8] sm:$0xff]  ;;  %v203_v25 = vpack.c.bf16 %v123_v19, %v122_v18  ;;  %v58_v28 = vld [vmem:[%s3434_s0 + $0xf0] sm:$0xff]  ;;  %vm1654_vm4 = vcmask 1042434   ;;  %vm1656_vm5 = vcmask 1043459   ;;  %vm1658_vm6 = vcmask 1044484  }
  0x32   :  { %v124_v22 = vld [vmem:[%s3434_s0 + $0x300] sm:$0xff]  ;;  %v125_v23 = vld [vmem:[%s3434_s0 + $0x308] sm:$0xff]  ;;  %v170_v26 = vpack.c.bf16 %v57_v21, %v56_v20  ;;  %v59_v29 = vld [vmem:[%s3434_s0 + $0xf8] sm:$0xff]  ;;  %vm1660_vm7 = vcmask 1045509   ;;  %vm1662_vm8 = vcmask 1046534   ;;  %vm1664_vm9 = vcmask 1047559  }
  0x33   :  { %v204_v27 = vpack.c.bf16 %v125_v23, %v124_v22  ;;  %v126_v30 = vld [vmem:[%s3434_s0 + $0x310] sm:$0xff]  ;;  %v127_v31 = vld [vmem:[%s3434_s0 + $0x318] sm:$0xff]  ;;  %v60_v32 = vld [vmem:[%s3434_s0 + $0x100] sm:$0xff]  ;;  %v171_v36 = vpack.c.bf16 %v59_v29, %v58_v28 }
  0x34   :  { %v61_v33 = vld [vmem:[%s3434_s0 + $0x108] sm:$0xff]  ;;  %v128_v34 = vld [vmem:[%s3434_s0 + $0x320] sm:$0xff]  ;;  %v205_v37 = vpack.c.bf16 %v127_v31, %v126_v30  ;;  %v62_v40 = vld [vmem:[%s3434_s0 + $0x110] sm:$0xff] }
  0x35   :  { %v129_v35 = vld [vmem:[%s3434_s0 + $0x328] sm:$0xff]  ;;  %v172_v38 = vpack.c.bf16 %v61_v33, %v60_v32  ;;  %v63_v41 = vld [vmem:[%s3434_s0 + $0x118] sm:$0xff]  ;;  %v130_v42 = vld [vmem:[%s3434_s0 + $0x330] sm:$0xff] }
  0x36   :  { %2042 = vmatmul.mubr.msk.bf16.gmra.mrb[24].mxu0 %vm228_vm1, %v169_v24  ;;  %v206_v39 = vpack.c.bf16 %v129_v35, %v128_v34  ;;  %v131_v43 = vld [vmem:[%s3434_s0 + $0x338] sm:$0xff]  ;;  %v64_v44 = vld [vmem:[%s3434_s0 + $0x120] sm:$0xff]  ;;  %v65_v45 = vld [vmem:[%s3434_s0 + $0x128] sm:$0xff]  ;;  %v173_v48 = vpack.c.bf16 %v63_v41, %v62_v40 }
  0x37   :  { %2110 = vmatmul.mubr.msk.bf16.gmra.mrb[24].mxu1 %vm228_vm1, %v203_v25  ;;  %2045 = vmatprep.mubr.msk.bf16.mxu0 %vm228_vm1, %v170_v26  ;;  %v132_v46 = vld [vmem:[%s3434_s0 + $0x340] sm:$0xff]  ;;  %v133_v47 = vld [vmem:[%s3434_s0 + $0x348] sm:$0xff]  ;;  %v207_v49 = vpack.c.bf16 %v131_v43, %v130_v42  ;;  %v174_v50 = vpack.c.bf16 %v65_v45, %v64_v44  ;;  %v66_v52 = vld [vmem:[%s3434_s0 + $0x130] sm:$0xff] }
  0x38   :  { %2113 = vmatprep.mubr.msk.bf16.mxu1 %vm228_vm1, %v204_v27  ;;  %v208_v51 = vpack.c.bf16 %v133_v47, %v132_v46  ;;  %v67_v53 = vld [vmem:[%s3434_s0 + $0x138] sm:$0xff]  ;;  %v134_v54 = vld [vmem:[%s3434_s0 + $0x350] sm:$0xff]  ;;  %v68_v56 = vld [vmem:[%s3434_s0 + $0x140] sm:$0xff] }
  0x39   :  { %v135_v55 = vld [vmem:[%s3434_s0 + $0x358] sm:$0xff]  ;;  %v69_v57 = vld [vmem:[%s3434_s0 + $0x148] sm:$0xff]  ;;  %v136_v58 = vld [vmem:[%s3434_s0 + $0x360] sm:$0xff]  ;;  %v175_v60 = vpack.c.bf16 %v67_v53, %v66_v52 }
  0x3a   :  { %v137_v59 = vld [vmem:[%s3434_s0 + $0x368] sm:$0xff]  ;;  %v209_v61 = vpack.c.bf16 %v135_v55, %v134_v54  ;;  %v176_v62 = vpack.c.bf16 %v69_v57, %v68_v56  ;;  %v70_v0 = vld [vmem:[%s3434_s0 + $0x150] sm:$0xff]  ;;  %v71_v1 = vld [vmem:[%s3434_s0 + $0x158] sm:$0xff] }
  0x3b   :  { %v210_v63 = vpack.c.bf16 %v137_v59, %v136_v58  ;;  %v138_v2 = vld [vmem:[%s3434_s0 + $0x370] sm:$0xff]  ;;  %v139_v3 = vld [vmem:[%s3434_s0 + $0x378] sm:$0xff]  ;;  %v72_v4 = vld [vmem:[%s3434_s0 + $0x160] sm:$0xff]  ;;  %v177_v8 = vpack.c.bf16 %v71_v1, %v70_v0 }
  0x3c   :  { %v73_v5 = vld [vmem:[%s3434_s0 + $0x168] sm:$0xff]  ;;  %v140_v6 = vld [vmem:[%s3434_s0 + $0x380] sm:$0xff]  ;;  %v211_v9 = vpack.c.bf16 %v139_v3, %v138_v2  ;;  %v74_v12 = vld [vmem:[%s3434_s0 + $0x170] sm:$0xff] }
  0x3d   :  { %v141_v7 = vld [vmem:[%s3434_s0 + $0x388] sm:$0xff]  ;;  %v178_v10 = vpack.c.bf16 %v73_v5, %v72_v4  ;;  %v75_v13 = vld [vmem:[%s3434_s0 + $0x178] sm:$0xff]  ;;  %v142_v14 = vld [vmem:[%s3434_s0 + $0x390] sm:$0xff] }
  0x3e   :  { %2046 = vmatmul.mubr.msk.bf16.gmra.mrb[28].mxu0 %vm228_vm1, %v171_v36  ;;  %v212_v11 = vpack.c.bf16 %v141_v7, %v140_v6  ;;  %v143_v15 = vld [vmem:[%s3434_s0 + $0x398] sm:$0xff]  ;;  %v76_v16 = vld [vmem:[%s3434_s0 + $0x180] sm:$0xff]  ;;  %v77_v17 = vld [vmem:[%s3434_s0 + $0x188] sm:$0xff]  ;;  %v179_v20 = vpack.c.bf16 %v75_v13, %v74_v12 }
  0x3f   :  { %2114 = vmatmul.mubr.msk.bf16.gmra.mrb[28].mxu1 %vm228_vm1, %v205_v37  ;;  %2049 = vmatprep.mubr.msk.bf16.mxu0 %vm228_vm1, %v172_v38  ;;  %v144_v18 = vld [vmem:[%s3434_s0 + $0x3a0] sm:$0xff]  ;;  %v145_v19 = vld [vmem:[%s3434_s0 + $0x3a8] sm:$0xff]  ;;  %v213_v21 = vpack.c.bf16 %v143_v15, %v142_v14  ;;  %v180_v22 = vpack.c.bf16 %v77_v17, %v76_v16  ;;  %v78_v24 = vld [vmem:[%s3434_s0 + $0x190] sm:$0xff] }
  0x40   :  { %2117 = vmatprep.mubr.msk.bf16.mxu1 %vm228_vm1, %v206_v39  ;;  %v214_v23 = vpack.c.bf16 %v145_v19, %v144_v18  ;;  %v79_v25 = vld [vmem:[%s3434_s0 + $0x198] sm:$0xff]  ;;  %v146_v26 = vld [vmem:[%s3434_s0 + $0x3b0] sm:$0xff]  ;;  %v80_v28 = vld [vmem:[%s3434_s0 + $0x1a0] sm:$0xff] }
  0x41   :  { %v147_v27 = vld [vmem:[%s3434_s0 + $0x3b8] sm:$0xff]  ;;  %v81_v29 = vld [vmem:[%s3434_s0 + $0x1a8] sm:$0xff]  ;;  %v148_v30 = vld [vmem:[%s3434_s0 + $0x3c0] sm:$0xff]  ;;  %v181_v32 = vpack.c.bf16 %v79_v25, %v78_v24 }
  0x42   :  { %v149_v31 = vld [vmem:[%s3434_s0 + $0x3c8] sm:$0xff]  ;;  %v215_v33 = vpack.c.bf16 %v147_v27, %v146_v26  ;;  %v182_v34 = vpack.c.bf16 %v81_v29, %v80_v28  ;;  %v82_v36 = vld [vmem:[%s3434_s0 + $0x1b0] sm:$0xff]  ;;  %v83_v37 = vld [vmem:[%s3434_s0 + $0x1b8] sm:$0xff] }
  0x43   :  { %v216_v35 = vpack.c.bf16 %v149_v31, %v148_v30  ;;  %v150_v38 = vld [vmem:[%s3434_s0 + $0x3d0] sm:$0xff]  ;;  %v151_v39 = vld [vmem:[%s3434_s0 + $0x3d8] sm:$0xff]  ;;  %v84_v40 = vld [vmem:[%s3434_s0 + $0x1c0] sm:$0xff]  ;;  %v183_v44 = vpack.c.bf16 %v83_v37, %v82_v36 }
  0x44   :  { %v85_v41 = vld [vmem:[%s3434_s0 + $0x1c8] sm:$0xff]  ;;  %v152_v42 = vld [vmem:[%s3434_s0 + $0x3e0] sm:$0xff]  ;;  %v217_v45 = vpack.c.bf16 %v151_v39, %v150_v38  ;;  %v90_v57 = vld [vmem:[%s3434_s0 + $0x1f0] sm:$0xff] }
  0x45   :  { %v153_v43 = vld [vmem:[%s3434_s0 + $0x3e8] sm:$0xff]  ;;  %v184_v46 = vpack.c.bf16 %v85_v41, %v84_v40  ;;  %v88_v52 = vld [vmem:[%s3434_s0 + $0x1e0] sm:$0xff]  ;;  %v91_v58 = vld [vmem:[%s3434_s0 + $0x1f8] sm:$0xff] }
  0x46   :  { %2050 = vmatmul.mubr.msk.bf16.gmra.mrb[32].mxu0 %vm228_vm1, %v173_v48  ;;  %v218_v47 = vpack.c.bf16 %v153_v43, %v152_v42  ;;  %v86_v48 = vld [vmem:[%s3434_s0 + $0x1d0] sm:$0xff]  ;;  %v89_v53 = vld [vmem:[%s3434_s0 + $0x1e8] sm:$0xff]  ;;  %v92_v59 = vld [vmem:[%s3434_s0 + $0x200] sm:$0xff] }
  0x47   :  { %2118 = vmatmul.mubr.msk.bf16.gmra.mrb[32].mxu1 %vm228_vm1, %v207_v49  ;;  %2053 = vmatprep.mubr.msk.bf16.mxu0 %vm228_vm1, %v174_v50  ;;  %v87_v49 = vld [vmem:[%s3434_s0 + $0x1d8] sm:$0xff]  ;;  %v154_v50 = vld [vmem:[%s3434_s0 + $0x3f0] sm:$0xff]  ;;  %v186_v56 = vpack.c.bf16 %v89_v53, %v88_v52  ;;  %v2171_v2 = vld [vmem:[%s3439_s5] sm:$0xff]  }
  0x48   :  { %2121 = vmatprep.mubr.msk.bf16.mxu1 %vm228_vm1, %v208_v51  ;;  %v155_v51 = vld [vmem:[%s3434_s0 + $0x3f8] sm:$0xff]  ;;  %v185_v54 = vpack.c.bf16 %v87_v49, %v86_v48  ;;  %2145 = vmatprep.subr.bf16.mxu1 %v2171_v2  ;;  %v2701_v3 = vld [vmem:[%s3437_s3] ss:$0 sm:$0xff] }
  0x49   :  { %v219_v55 = vpack.c.bf16 %v155_v51, %v154_v50  ;;  %v95_v0 = vld [vmem:[%s3434_s0 + $0x218] sm:$0xff]  ;;  %2146 = vmatpush3.bf16.msra.mxu1 %v2171_v2 }
  0x4e   :  { %2054 = vmatmul.mubr.msk.bf16.gmra.mrb[36].mxu0 %vm228_vm1, %v175_v60  ;;  %v93_v60 = vld [vmem:[%s3434_s0 + $0x208] sm:$0xff] }
  0x4f   :  { %2122 = vmatmul.mubr.msk.bf16.gmra.mrb[36].mxu1 %vm228_vm1, %v209_v61  ;;  %2057 = vmatprep.mubr.msk.bf16.mxu0 %vm228_vm1, %v176_v62  ;;  %v187_v61 = vpack.c.bf16 %v91_v58, %v90_v57  ;;  %v188_v62 = vpack.c.bf16 %v93_v60, %v92_v59 }
  0x50   :  { %2125 = vmatprep.mubr.msk.bf16.mxu1 %vm228_vm1, %v210_v63  ;;  %v94_v63 = vld [vmem:[%s3434_s0 + $0x210] sm:$0xff] }
  0x51   :  { %v189_v1 = vpack.c.bf16 %v95_v0, %v94_v63 }
  0x56   :  { %2058 = vmatmul.mubr.msk.bf16.gmra.mrb[40].mxu0 %vm228_vm1, %v177_v8 }
  0x57   :  { %2126 = vmatmul.mubr.msk.bf16.gmra.mrb[40].mxu1 %vm228_vm1, %v211_v9  ;;  %2061 = vmatprep.mubr.msk.bf16.mxu0 %vm228_vm1, %v178_v10 }
  0x58   :  { %2129 = vmatprep.mubr.msk.bf16.mxu1 %vm228_vm1, %v212_v11 }
  0x5e   :  { %2062 = vmatmul.mubr.msk.bf16.gmra.mrb[44].mxu0 %vm228_vm1, %v179_v20 }
  0x5f   :  { %2130 = vmatmul.mubr.msk.bf16.gmra.mrb[44].mxu1 %vm228_vm1, %v213_v21  ;;  %2065 = vmatprep.mubr.msk.bf16.mxu0 %vm228_vm1, %v180_v22 }
  0x60   :  { %2133 = vmatprep.mubr.msk.bf16.mxu1 %vm228_vm1, %v214_v23 }
  0x66   :  { %2066 = vmatmul.mubr.msk.bf16.gmra.mrb[48].mxu0 %vm228_vm1, %v181_v32 }
  0x67   :  { %2134 = vmatmul.mubr.msk.bf16.gmra.mrb[48].mxu1 %vm228_vm1, %v215_v33  ;;  %2069 = vmatprep.mubr.msk.bf16.mxu0 %vm228_vm1, %v182_v34 }
  0x68   :  { %2137 = vmatprep.mubr.msk.bf16.mxu1 %vm228_vm1, %v216_v35  ;;  %v2172_v35 = vld [vmem:[%s3439_s5 + $0x8] sm:$0xff]  }
  0x69   :  { %2147 = vmatprep.subr.bf16.mxu1 %v2172_v35 }
  0x6a   :  { %2148 = vmatpush3.bf16.msra.mxu1 %v2172_v35 }
  0x6e   :  { %2070 = vmatmul.mubr.msk.bf16.gmra.mrb[52].mxu0 %vm228_vm1, %v183_v44 }
  0x6f   :  { %2138 = vmatmul.mubr.msk.bf16.gmra.mrb[52].mxu1 %vm228_vm1, %v217_v45  ;;  %2073 = vmatprep.mubr.msk.bf16.mxu0 %vm228_vm1, %v184_v46 }
  0x70   :  { %2141 = vmatprep.mubr.msk.bf16.mxu1 %vm228_vm1, %v218_v47 }
  0x76   :  { %2074 = vmatmul.mubr.msk.bf16.gmra.mrb[56].mxu0 %vm228_vm1, %v185_v54 }
  0x77   :  { %2142 = vmatmul.mubr.msk.bf16.gmra.mrb[56].mxu1 %vm228_vm1, %v219_v55  ;;  %2077 = vmatprep.mubr.msk.bf16.mxu0 %vm228_vm1, %v186_v56 }
  0x7e   :  { %2078 = vmatmul.mubr.msk.bf16.gmra.mrb[60].mxu0 %vm228_vm1, %v187_v61 }
  0x7f   :  { %2081 = vmatprep.mubr.msk.bf16.mxu0 %vm228_vm1, %v188_v62 }
  0x86   :  { %2082 = vmatmul.mubr.msk.bf16.gmra.mrb[64].mxu0 %vm228_vm1, %v189_v1 }
  0xd9   :  { %v2019_v4 = vpop.f32.mrb[0].mxu0 }
  0xda   :  { %v2087_v5 = vpop.f32.mrb[0].mxu1  ;;  %v468_v6 = vadd.f32 %v2019_v4, %v2701_v3  ;;  %v459_v7 = vpop.f32.mrb[1].mxu0 }
  0xdb   :  { %v740_v8 = vadd.f32 %v2087_v5, %v2701_v3  ;;  %v731_v9 = vpop.f32.mrb[1].mxu1  ;;  %v460_v10 = vadd.f32 %v2701_v3, %v459_v7  ;;  %v2020_v11 = vpop.f32.mrb[2].mxu0 }
  0xdc   :  { %v732_v12 = vadd.f32 %v2701_v3, %v731_v9  ;;  %v2088_v13 = vpop.f32.mrb[2].mxu1  ;;  %v471_v14 = vadd.f32 %v2020_v11, %v2701_v3  ;;  %v462_v15 = vpop.f32.mrb[3].mxu0  ;;  %v972_v23 = vmax.f32 %v468_v6, 0.0 }
  0xdd   :  { %v1040_v16 = vmax.f32 %v740_v8, 0.0  ;;  %v743_v17 = vadd.f32 %v2088_v13, %v2701_v3  ;;  %v734_v18 = vpop.f32.mrb[3].mxu1  ;;  %v970_v19 = vmax.f32 %v460_v10, 0.0  ;;  %v463_v20 = vadd.f32 %v2701_v3, %v462_v15 }
  0xde   :  { %v1038_v21 = vmax.f32 %v732_v12, 0.0  ;;  %v735_v22 = vadd.f32 %v2701_v3, %v734_v18  ;;  %v973_v28 = vmax.f32 %v471_v14, 0.0  ;;  %v1102_v40 = vsel %vm1098_vm2, %v972_v23, -inf }
  0xdf   :  { %v971_v24 = vmax.f32 %v463_v20, 0.0  ;;  %v1041_v26 = vmax.f32 %v743_v17, 0.0  ;;  %v1323_v29 = vsel %vm1098_vm2, %v1040_v16, -inf  ;;  %v1099_v30 = vsel %vm1098_vm2, %v970_v19, -inf }
  0xe0   :  { %v1320_v25 = vsel %vm1098_vm2, %v1038_v21, -inf  ;;  %v1039_v27 = vmax.f32 %v735_v22, 0.0  ;;  %v1104_v51 = vsel %vm1098_vm2, %v973_v28, -inf }
  0xe1   :  { %v1100_v31 = vsel %vm1098_vm2, %v971_v24, -inf  ;;  %v2023_v32 = vpop.f32.mrb[4].mxu0  ;;  %v1325_v44 = vsel %vm1098_vm2, %v1041_v26, -inf }
  0xe2   :  { %v1321_v33 = vsel %vm1098_vm2, %v1039_v27, -inf  ;;  %v2091_v34 = vpop.f32.mrb[4].mxu1  ;;  %v1101_v36 = vmax.f32 %v1099_v30, %v1100_v31  ;;  %v475_v37 = vpop.f32.mrb[5].mxu0  ;;  %v484_v41 = vadd.f32 %v2023_v32, %v2701_v3 }
  0xe3   :  { %v1322_v38 = vmax.f32 %v1320_v25, %v1321_v33  ;;  %v747_v39 = vpop.f32.mrb[5].mxu1  ;;  %v476_v42 = vadd.f32 %v2701_v3, %v475_v37  ;;  %v2024_v43 = vpop.f32.mrb[6].mxu0  ;;  %v756_v60 = vadd.f32 %v2091_v34, %v2701_v3 }
  0xe4   :  { %v2092_v45 = vpop.f32.mrb[6].mxu1  ;;  %v1103_v46 = vmax.f32 %v1101_v36, %v1102_v40  ;;  %v478_v47 = vpop.f32.mrb[7].mxu0  ;;  %v748_v49 = vadd.f32 %v2701_v3, %v747_v39  ;;  %v487_v53 = vadd.f32 %v2024_v43, %v2701_v3  ;;  %v976_v57 = vmax.f32 %v484_v41, 0.0 }
  0xe5   :  { %v1324_v48 = vmax.f32 %v1322_v38, %v1323_v29  ;;  %v750_v50 = vpop.f32.mrb[7].mxu1  ;;  %v974_v52 = vmax.f32 %v476_v42, 0.0  ;;  %v479_v54 = vadd.f32 %v2701_v3, %v478_v47  ;;  %v759_v8 = vadd.f32 %v2092_v45, %v2701_v3 }
  0xe6   :  { %v1105_v55 = vmax.f32 %v1103_v46, %v1104_v51  ;;  %v1042_v61 = vmax.f32 %v748_v49, 0.0  ;;  %v977_v63 = vmax.f32 %v487_v53, 0.0  ;;  %v751_v2 = vadd.f32 %v2701_v3, %v750_v50 }
  0xe7   :  { %v2727_v56 = vmax.f32 %v1324_v48, %v1325_v44  ;;  %v975_v58 = vmax.f32 %v479_v54, 0.0  ;;  %v1112_v62 = vsel %vm1098_vm2, %v974_v52, -inf  ;;  %v1115_v10 = vsel %vm1098_vm2, %v976_v57, -inf }
  0xe8   :  { %v1106_v59 = vrot.slane %v1105_v55, 4  ;;  %v1043_v14 = vmax.f32 %v751_v2, 0.0  ;;  %v1044_v18 = vmax.f32 %v756_v60, 0.0  ;;  %v1333_v19 = vsel %vm1098_vm2, %v1042_v61, -inf }
  0xe9   :  { %v1113_v0 = vsel %vm1098_vm2, %v975_v58, -inf  ;;  %v2027_v1 = vpop.f32.mrb[8].mxu0  ;;  %v1117_v22 = vsel %vm1098_vm2, %v977_v63, -inf  ;;  %v1045_v28 = vmax.f32 %v759_v8, 0.0 }
  0xea   :  { %v2095_v4 = vpop.f32.mrb[8].mxu1  ;;  %v1107_v5 = vmax.f32 %v1105_v55, %v1106_v59  ;;  %v1114_v6 = vmax.f32 %v1112_v62, %v1113_v0  ;;  %v491_v7 = vpop.f32.mrb[9].mxu0  ;;  %v500_v11 = vadd.f32 %v2027_v1, %v2701_v3  ;;  %v1334_v31 = vsel %vm1098_vm2, %v1043_v14, -inf }
  0xeb   :  { %v763_v9 = vpop.f32.mrb[9].mxu1  ;;  %v492_v12 = vadd.f32 %v2701_v3, %v491_v7  ;;  %v2028_v13 = vpop.f32.mrb[10].mxu0  ;;  %v1336_v33 = vsel %vm1098_vm2, %v1044_v18, -inf  ;;  %v1335_v34 = vmax.f32 %v1333_v19, %v1334_v31  ;;  %v772_v35 = vadd.f32 %v2095_v4, %v2701_v3 }
  0xec   :  { %v2096_v15 = vpop.f32.mrb[10].mxu1  ;;  %v1108_v16 = vrot.slane %v1107_v5, 2  ;;  %v1116_v17 = vmax.f32 %v1114_v6, %v1115_v10  ;;  %v494_v20 = vpop.f32.mrb[11].mxu0  ;;  %v503_v24 = vadd.f32 %v2028_v13, %v2701_v3  ;;  %v980_v29 = vmax.f32 %v500_v11, 0.0 }
  0xed   :  { %v766_v21 = vpop.f32.mrb[11].mxu1  ;;  %v978_v23 = vmax.f32 %v492_v12, 0.0  ;;  %v495_v25 = vadd.f32 %v2701_v3, %v494_v20  ;;  %v1338_v44 = vsel %vm1098_vm2, %v1045_v28, -inf  ;;  %v1337_v48 = vmax.f32 %v1335_v34, %v1336_v33 }
  0xee   :  { %v1109_v26 = vmax.f32 %v1107_v5, %v1108_v16  ;;  %v1118_v27 = vmax.f32 %v1116_v17, %v1117_v22  ;;  %v981_v38 = vmax.f32 %v503_v24, 0.0  ;;  %v1128_v47 = vsel %vm1098_vm2, %v980_v29, -inf }
  0xef   :  { %v979_v30 = vmax.f32 %v495_v25, 0.0  ;;  %v1125_v37 = vsel %vm1098_vm2, %v978_v23, -inf  ;;  %v764_v54 = vadd.f32 %v2701_v3, %v763_v9  ;;  %v2759_v60 = vmax.f32 %v1337_v48, %v1338_v44 }
  0xf0   :  { %v1119_v32 = vrot.slane %v1118_v27, 4  ;;  %v1110_v36 = vrot.slane %v1109_v26, 1  ;;  %v1130_v59 = vsel %vm1098_vm2, %v981_v38, -inf  ;;  %v1048_v61 = vmax.f32 %v772_v35, 0.0 }
  0xf1   :  { %v1126_v39 = vsel %vm1098_vm2, %v979_v30, -inf  ;;  %v2031_v40 = vpop.f32.mrb[12].mxu0  ;;  %v1046_v6 = vmax.f32 %v764_v54, 0.0  ;;  %v775_v10 = vadd.f32 %v2096_v15, %v2701_v3  ;;  %v767_v11 = vadd.f32 %v2701_v3, %v766_v21 }
  0xf2   :  { %v2746_v41 = vpop.f32.mrb[12].mxu1  ;;  %v1120_v42 = vmax.f32 %v1118_v27, %v1119_v32  ;;  %v1127_v43 = vmax.f32 %v1125_v37, %v1126_v39  ;;  %v507_v45 = vpop.f32.mrb[13].mxu0  ;;  %v1111_v58 = vmax.f32 %v1109_v26, %v1110_v36  ;;  %v516_v0 = vadd.f32 %v2031_v40, %v2701_v3 }
  0xf3   :  { %v2749_v46 = vpop.f32.mrb[13].mxu1  ;;  %v508_v49 = vadd.f32 %v2701_v3, %v507_v45  ;;  %v2032_v50 = vpop.f32.mrb[14].mxu0  ;;  %v1349_v9 = vsel %vm1098_vm2, %v1048_v61, -inf  ;;  %v1346_v23 = vsel %vm1098_vm2, %v1046_v6, -inf  ;;  %v1049_v24 = vmax.f32 %v775_v10, 0.0 }
  0xf4   :  { %v2753_v51 = vpop.f32.mrb[14].mxu1  ;;  %v1121_v52 = vrot.slane %v1120_v42, 2  ;;  %v1129_v53 = vmax.f32 %v1127_v43, %v1128_v47  ;;  %v510_v55 = vpop.f32.mrb[15].mxu0  ;;  %v519_v2 = vadd.f32 %v2032_v50, %v2701_v3  ;;  %v1515_v8 = vpack.c.bf16 %v1111_v58, %v1111_v58 }
  0xf5   :  { %v2756_v57 = vpop.f32.mrb[15].mxu1  ;;  %v982_v1 = vmax.f32 %v508_v49, 0.0  ;;  %v511_v7 = vadd.f32 %v2701_v3, %v510_v55  ;;  %v984_v17 = vmax.f32 %v516_v0, 0.0  ;;  %v1047_v25 = vmax.f32 %v767_v11, 0.0 }
  0xf6   :  { %v1122_v62 = vmax.f32 %v1120_v42, %v1121_v52  ;;  %v1131_v63 = vmax.f32 %v1129_v53, %v1130_v59  ;;  %v985_v28 = vmax.f32 %v519_v2, 0.0  ;;  %v1620_v32 = vunpack.c.l.b16 %v1515_v8 }
  0xf7   :  { %v983_v18 = vmax.f32 %v511_v7, 0.0  ;;  %v1138_v22 = vsel %vm1098_vm2, %v982_v1, -inf  ;;  %v1347_v34 = vsel %vm1098_vm2, %v1047_v25, -inf  ;;  %v1141_v38 = vsel %vm1098_vm2, %v984_v17, -inf }
  0xf8   :  { %v1123_v4 = vrot.slane %v1122_v62, 1  ;;  %v1132_v5 = vrot.slane %v1131_v63, 4  ;;  %v1348_v39 = vmax.f32 %v1346_v23, %v1347_v34  ;;  %v1351_v42 = vsel %vm1098_vm2, %v1049_v24, -inf }
  0xf9   :  { %v2035_v12 = vpop.f32.mrb[16].mxu0  ;;  %v1139_v29 = vsel %vm1098_vm2, %v983_v18, -inf  ;;  %v1143_v45 = vsel %vm1098_vm2, %v985_v28, -inf  ;;  %v788_v58 = vadd.f32 %v2746_v41, %v2701_v3  ;;  %v780_v59 = vadd.f32 %v2701_v3, %v2749_v46 }
  0xfa   :  { %v2767_v13 = vpop.f32.mrb[16].mxu1  ;;  %v1124_v14 = vmax.f32 %v1122_v62, %v1123_v4  ;;  %v1133_v16 = vmax.f32 %v1131_v63, %v1132_v5  ;;  %v523_v19 = vpop.f32.mrb[17].mxu0  ;;  %v1140_v33 = vmax.f32 %v1138_v22, %v1139_v29  ;;  %v1350_v47 = vmax.f32 %v1348_v39, %v1349_v9 }
  0xfb   :  { %v2769_v20 = vpop.f32.mrb[17].mxu1  ;;  %v2036_v26 = vpop.f32.mrb[18].mxu0  ;;  %v524_v35 = vadd.f32 %v2701_v3, %v523_v19  ;;  %v532_v49 = vadd.f32 %v2035_v12, %v2701_v3  ;;  %v1050_v8 = vmax.f32 %v780_v59, 0.0  ;;  %v791_v46 = vadd.f32 %v2753_v51, %v2701_v3 }
  0xfc   :  { %v2773_v15 = vpop.f32.mrb[18].mxu1  ;;  %v1516_v21 = vpack.c.bf16 %v1124_v14, %v1124_v14  ;;  %v1134_v27 = vrot.slane %v1133_v16, 2  ;;  %v526_v30 = vpop.f32.mrb[19].mxu0  ;;  %v1142_v40 = vmax.f32 %v1140_v33, %v1141_v38  ;;  %v2787_v55 = vmax.f32 %v1350_v47, %v1351_v42 }
  0xfd   :  { %v2776_v31 = vpop.f32.mrb[19].mxu1  ;;  %v986_v50 = vmax.f32 %v524_v35, 0.0  ;;  %v535_v0 = vadd.f32 %v2036_v26, %v2701_v3  ;;  %v527_v1 = vadd.f32 %v2701_v3, %v526_v30  ;;  %v988_v41 = vmax.f32 %v532_v49, 0.0 }
  0xfe   :  { %v1621_v36 = vunpack.c.l.b16 %v1516_v21  ;;  %v1135_v37 = vmax.f32 %v1133_v16, %v1134_v27  ;;  %v1144_v48 = vmax.f32 %v1142_v40, %v1143_v45  ;;  %v1052_v12 = vmax.f32 %v788_v58, 0.0 }
  0xff   :  { %v987_v9 = vmax.f32 %v527_v1, 0.0  ;;  %v1151_v11 = vsel %vm1098_vm2, %v986_v50, -inf  ;;  %v989_v16 = vmax.f32 %v535_v0, 0.0  ;;  %v783_v18 = vadd.f32 %v2701_v3, %v2756_v57 }
 0x100   :  { %v1653_v43 = vsel %vm1652_vm3, %v1621_v36, %v1620_v32  ;;  %v1136_v44 = vrot.slane %v1135_v37, 1  ;;  %v1145_v63 = vrot.slane %v1144_v48, 4  ;;  %v1154_v23 = vsel %vm1098_vm2, %v988_v41, -inf }
 0x101   :  { %v2039_v52 = vpop.f32.mrb[20].mxu0  ;;  %v1152_v17 = vsel %vm1098_vm2, %v987_v9, -inf  ;;  %v1359_v24 = vsel %vm1098_vm2, %v1050_v8, -inf  ;;  %v1053_v51 = vmax.f32 %v791_v46, 0.0  ;;  %v1051_v25 = vmax.f32 %v783_v18, 0.0 }
 0x102   :  { %v2785_v53 = vpop.f32.mrb[20].mxu1  ;;  %v1137_v54 = vmax.f32 %v1135_v37, %v1136_v44  ;;  %v539_v61 = vpop.f32.mrb[21].mxu0  ;;  %v1146_v14 = vmax.f32 %v1144_v48, %v1145_v63  ;;  %v1153_v22 = vmax.f32 %v1151_v11, %v1152_v17  ;;  %v1327_v27 = vrot.slane %v2727_v56, 4 }
 0x103   :  { %v2793_v62 = vpop.f32.mrb[21].mxu1  ;;  %v2040_v2 = vpop.f32.mrb[22].mxu0  ;;  %v540_v29 = vadd.f32 %v2701_v3, %v539_v61  ;;  %v1362_v33 = vsel %vm1098_vm2, %v1052_v12, -inf  ;;  %v1156_v34 = vsel %vm1098_vm2, %v989_v16, -inf  ;;  %v1360_v35 = vsel %vm1098_vm2, %v1051_v25, -inf }
 0x104   :  { %v2797_v4 = vpop.f32.mrb[22].mxu1  ;;  %v1517_v5 = vpack.c.bf16 %v1137_v54, %v1137_v54  ;;  %v542_v6 = vpop.f32.mrb[23].mxu0  ;;  %v1155_v28 = vmax.f32 %v1153_v22, %v1154_v23  ;;  %v1147_v32 = vrot.slane %v1146_v14, 2  ;;  %v1361_v39 = vmax.f32 %v1359_v24, %v1360_v35 }
 0x105   :  { %v2799_v7 = vpop.f32.mrb[23].mxu1  ;;  %v548_v40 = vadd.f32 %v2039_v52, %v2701_v3  ;;  %v1364_v44 = vsel %vm1098_vm2, %v1053_v51, -inf  ;;  %v804_v45 = vadd.f32 %v2767_v13, %v2701_v3  ;;  %v990_v48 = vmax.f32 %v540_v29, 0.0  ;;  %v2173_v52 = vld [vmem:[%s3439_s5 + $0x10] sm:$0xff]  }
 0x106   :  { %v1622_v10 = vunpack.c.l.b16 %v1517_v5  ;;  %v1157_v38 = vmax.f32 %v1155_v28, %v1156_v34  ;;  %v1363_v47 = vmax.f32 %v1361_v39, %v1362_v33  ;;  %v551_v49 = vadd.f32 %v2040_v2, %v2701_v3  ;;  %2149 = vmatprep.subr.bf16.mxu1 %v2173_v52 }
 0x107   :  { %v796_v50 = vadd.f32 %v2701_v3, %v2769_v20  ;;  %v1328_v54 = vmax.f32 %v2727_v56, %v1327_v27  ;;  %v1148_v58 = vmax.f32 %v1146_v14, %v1147_v32  ;;  %v543_v59 = vadd.f32 %v2701_v3, %v542_v6  ;;  %2150 = vmatpush3.bf16.msra.mxu1 %v2173_v52 }
 0x108   :  { %v2808_v19 = vsel %vm1654_vm4, %v1622_v10, %v1653_v43  ;;  %v1158_v61 = vrot.slane %v1157_v38, 4  ;;  %v2843_v63 = vmax.f32 %v1363_v47, %v1364_v44  ;;  %v992_v13 = vmax.f32 %v548_v40, 0.0 }
 0x109   :  { %3454 = vst [vmem:[#allocation5_spill] sm:$0xff] %v2808_v19  ;;  %v2812_v26 = vpop.f32.mrb[24].mxu0  ;;  %v1054_v0 = vmax.f32 %v796_v50, 0.0  ;;  %v1056_v1 = vmax.f32 %v804_v45, 0.0  ;;  %v991_v2 = vmax.f32 %v543_v59, 0.0  ;;  %v807_v20 = vadd.f32 %v2773_v15, %v2701_v3 }
 0x10a   :  { %v2814_v21 = vpop.f32.mrb[24].mxu1  ;;  %v555_v57 = vpop.f32.mrb[25].mxu0  ;;  %v799_v5 = vadd.f32 %v2701_v3, %v2776_v31  ;;  %v1340_v6 = vrot.slane %v2759_v60, 4  ;;  %v1353_v8 = vrot.slane %v2787_v55, 4  ;;  %v1164_v9 = vsel %vm1098_vm2, %v990_v48, -inf }
 0x10b   :  { %v2818_v30 = vpop.f32.mrb[25].mxu1  ;;  %v2823_v36 = vpop.f32.mrb[26].mxu0  ;;  %v993_v46 = vmax.f32 %v551_v49, 0.0  ;;  %v1372_v15 = vsel %vm1098_vm2, %v1054_v0, -inf  ;;  %v1165_v31 = vsel %vm1098_vm2, %v991_v2, -inf  ;;  %v1057_v12 = vmax.f32 %v807_v20, 0.0 }
 0x10c   :  { %v2825_v37 = vpop.f32.mrb[26].mxu1  ;;  %v2828_v42 = vpop.f32.mrb[27].mxu0  ;;  %v1055_v14 = vmax.f32 %v799_v5, 0.0  ;;  %v1149_v18 = vrot.slane %v1148_v58, 1  ;;  %v1159_v22 = vmax.f32 %v1157_v38, %v1158_v61  ;;  %v1166_v23 = vmax.f32 %v1164_v9, %v1165_v31 }
 0x10d   :  { %v2830_v43 = vpop.f32.mrb[27].mxu1  ;;  %v1329_v25 = vrot.slane %v1328_v54, 2  ;;  %v1167_v27 = vsel %vm1098_vm2, %v992_v13, -inf  ;;  %v1375_v28 = vsel %vm1098_vm2, %v1056_v1, -inf  ;;  %v556_v34 = vadd.f32 %v2701_v3, %v555_v57 }
 0x10e   :  { %v1373_v29 = vsel %vm1098_vm2, %v1055_v14, -inf  ;;  %v1168_v32 = vmax.f32 %v1166_v23, %v1167_v27  ;;  %v1341_v35 = vmax.f32 %v2759_v60, %v1340_v6  ;;  %v1354_v38 = vmax.f32 %v2787_v55, %v1353_v8 }
 0x10f   :  { %v1374_v33 = vmax.f32 %v1372_v15, %v1373_v29  ;;  %v1169_v39 = vsel %vm1098_vm2, %v993_v46, -inf  ;;  %v1377_v40 = vsel %vm1098_vm2, %v1057_v12, -inf  ;;  %v1150_v44 = vmax.f32 %v1148_v58, %v1149_v18 }
 0x110   :  { %v1160_v45 = vrot.slane %v1159_v22, 2  ;;  %v1170_v47 = vmax.f32 %v1168_v32, %v1169_v39  ;;  %v2878_v49 = vmax.f32 %v1328_v54, %v1329_v25  ;;  %v564_v50 = vadd.f32 %v2812_v26, %v2701_v3 }
 0x111   :  { %v2849_v41 = vpop.f32.mrb[28].mxu0  ;;  %v1376_v48 = vmax.f32 %v1374_v33, %v1375_v28  ;;  %v820_v57 = vadd.f32 %v2785_v53, %v2701_v3  ;;  %v812_v60 = vadd.f32 %v2701_v3, %v2793_v62  ;;  %v994_v61 = vmax.f32 %v556_v34, 0.0 }
 0x112   :  { %v2851_v56 = vpop.f32.mrb[28].mxu1  ;;  %v2856_v10 = vpop.f32.mrb[29].mxu0  ;;  %3455 = vst [vmem:[#allocation6_spill] sm:$0xff] %v2878_v49  ;;  %v1171_v59 = vrot.slane %v1170_v47, 4  ;;  %v567_v54 = vadd.f32 %v2823_v36, %v2701_v3  ;;  %v1342_v0 = vrot.slane %v1341_v35, 2  ;;  %v559_v62 = vadd.f32 %v2701_v3, %v2828_v42 }
 0x113   :  { %v2858_v11 = vpop.f32.mrb[29].mxu1  ;;  %v2862_v16 = vpop.f32.mrb[30].mxu0  ;;  %v2890_v58 = vmax.f32 %v1376_v48, %v1377_v40  ;;  %v1058_v53 = vmax.f32 %v812_v60, 0.0  ;;  %v823_v1 = vadd.f32 %v2797_v4, %v2701_v3  ;;  %v1518_v5 = vpack.c.bf16 %v1150_v44, %v1150_v44 }
 0x114   :  { %v2864_v17 = vpop.f32.mrb[30].mxu1  ;;  %v2866_v24 = vpop.f32.mrb[31].mxu0  ;;  %v1355_v6 = vrot.slane %v1354_v38, 2  ;;  %v1161_v8 = vmax.f32 %v1159_v22, %v1160_v45  ;;  %v1172_v36 = vmax.f32 %v1170_v47, %v1171_v59  ;;  %v996_v15 = vmax.f32 %v564_v50, 0.0 }
 0x115   :  { %v2868_v51 = vpop.f32.mrb[31].mxu1  ;;  %v1060_v31 = vmax.f32 %v820_v57, 0.0  ;;  %v995_v12 = vmax.f32 %v559_v62, 0.0  ;;  %v815_v42 = vadd.f32 %v2701_v3, %v2799_v7  ;;  %v1366_v4 = vrot.slane %v2843_v63, 4 }
 0x116   :  { %v1173_v14 = vrot.slane %v1172_v36, 2  ;;  %v1177_v18 = vsel %vm1098_vm2, %v994_v61, -inf  ;;  %v997_v23 = vmax.f32 %v567_v54, 0.0  ;;  %v1385_v25 = vsel %vm1098_vm2, %v1058_v53, -inf }
 0x117   :  { %v1178_v22 = vsel %vm1098_vm2, %v995_v12, -inf  ;;  %v1061_v27 = vmax.f32 %v823_v1, 0.0  ;;  %v1059_v28 = vmax.f32 %v815_v42, 0.0  ;;  %v2916_v29 = vmax.f32 %v1341_v35, %v1342_v0 }
 0x118   :  { %v2918_v32 = vmax.f32 %v1354_v38, %v1355_v6  ;;  %v1162_v33 = vrot.slane %v1161_v8, 1  ;;  %v1179_v34 = vmax.f32 %v1177_v18, %v1178_v22  ;;  %v1180_v7 = vsel %vm1098_vm2, %v996_v15, -inf }
 0x119   :  { %v2886_v55 = vpop.f32.mrb[32].mxu0  ;;  %3456 = vst [vmem:[#allocation7_spill] sm:$0xff] %v2916_v29  ;;  %v1388_v39 = vsel %vm1098_vm2, %v1060_v31, -inf  ;;  %v1386_v40 = vsel %vm1098_vm2, %v1059_v28, -inf  ;;  %v572_v44 = vadd.f32 %v2701_v3, %v2856_v10  ;;  %v1174_v48 = vmax.f32 %v1172_v36, %v1173_v14 }
 0x11a   :  { %v2888_v52 = vpop.f32.mrb[32].mxu1  ;;  %v2894_v13 = vpop.f32.mrb[33].mxu0  ;;  %3457 = vst [vmem:[#allocation8_spill] sm:$0xff] %v2918_v32  ;;  %v1181_v35 = vmax.f32 %v1179_v34, %v1180_v7  ;;  %v1387_v50 = vmax.f32 %v1385_v25, %v1386_v40  ;;  %v580_v38 = vadd.f32 %v2849_v41, %v2701_v3  ;;  %v2935_v59 = vunpack.c.l.b16 %v1518_v5 }
 0x11b   :  { %v2896_v26 = vpop.f32.mrb[33].mxu1  ;;  %v2902_v2 = vpop.f32.mrb[34].mxu0  ;;  %v2938_v61 = vmax.f32 %v2843_v63, %v1366_v4  ;;  %v1182_v10 = vsel %vm1098_vm2, %v997_v23, -inf  ;;  %v1390_v54 = vsel %vm1098_vm2, %v1061_v27, -inf  ;;  %v2946_v62 = vmax.f32 %v1161_v8, %v1162_v33 }
 0x11c   :  { %v2904_v20 = vpop.f32.mrb[34].mxu1  ;;  %v2906_v9 = vpop.f32.mrb[35].mxu0  ;;  %3458 = vst [vmem:[#allocation9_spill] sm:$0xff] %v2935_v59  ;;  %v1183_v41 = vmax.f32 %v1181_v35, %v1182_v10  ;;  %v1389_v1 = vmax.f32 %v1387_v50, %v1388_v39  ;;  %v836_v6 = vadd.f32 %v2814_v21, %v2701_v3  ;;  %v998_v63 = vmax.f32 %v572_v44, 0.0 }
 0x11d   :  { %v2908_v46 = vpop.f32.mrb[35].mxu1  ;;  %3459 = vst [vmem:[#allocation10_spill] sm:$0xff] %v2938_v61  ;;  %v583_v15 = vadd.f32 %v2862_v16, %v2701_v3  ;;  %v828_v31 = vadd.f32 %v2701_v3, %v2818_v30  ;;  %v575_v8 = vadd.f32 %v2701_v3, %v2866_v24  ;;  %v1175_v12 = vrot.slane %v1174_v48, 1 }
 0x11e   :  { %v1184_v42 = vrot.slane %v1183_v41, 4  ;;  %v1391_v4 = vmax.f32 %v1389_v1, %v1390_v54  ;;  %v1000_v14 = vmax.f32 %v580_v38, 0.0  ;;  %v839_v25 = vadd.f32 %v2825_v37, %v2701_v3  ;;  %v2174_v37 = vld [vmem:[%s3439_s5 + $0x18] sm:$0xff]  }
 0x11f   :  { %v1062_v18 = vmax.f32 %v828_v31, 0.0  ;;  %v999_v23 = vmax.f32 %v575_v8, 0.0  ;;  %v1519_v16 = vpack.c.bf16 %v2946_v62, %v2946_v62  ;;  %v1379_v22 = vrot.slane %v2890_v58, 4  ;;  %2151 = vmatprep.subr.bf16.mxu1 %v2174_v37 }
 0x120   :  { %v1185_v30 = vmax.f32 %v1183_v41, %v1184_v42  ;;  %v1064_v27 = vmax.f32 %v836_v6, 0.0  ;;  %v1190_v24 = vsel %vm1098_vm2, %v998_v63, -inf  ;;  %v1001_v28 = vmax.f32 %v583_v15, 0.0  ;;  %2152 = vmatpush3.bf16.msra.mxu1 %v2174_v37 }
 0x121   :  { %v2925_v45 = vpop.f32.mrb[36].mxu0  ;;  %v1191_v33 = vsel %vm1098_vm2, %v999_v23, -inf  ;;  %v831_v34 = vadd.f32 %v2701_v3, %v2830_v43  ;;  %v1176_v40 = vmax.f32 %v1174_v48, %v1175_v12  ;;  %v1193_v35 = vsel %vm1098_vm2, %v1000_v14, -inf }
 0x122   :  { %v2927_v47 = vpop.f32.mrb[36].mxu1  ;;  %v2931_v57 = vpop.f32.mrb[37].mxu0  ;;  %v1186_v44 = vrot.slane %v1185_v30, 2  ;;  %v1192_v50 = vmax.f32 %v1190_v24, %v1191_v33  ;;  %v1398_v54 = vsel %vm1098_vm2, %v1062_v18, -inf  ;;  %v1065_v43 = vmax.f32 %v839_v25, 0.0 }
 0x123   :  { %v2933_v60 = vpop.f32.mrb[37].mxu1  ;;  %v2942_v0 = vpop.f32.mrb[38].mxu0  ;;  %v1063_v62 = vmax.f32 %v831_v34, 0.0  ;;  %v844_v41 = vadd.f32 %v2701_v3, %v2858_v11  ;;  %v1392_v63 = vrot.slane %v1391_v4, 4  ;;  %v1401_v15 = vsel %vm1098_vm2, %v1064_v27, -inf }
 0x124   :  { %v2944_v53 = vpop.f32.mrb[38].mxu1  ;;  %v2950_v5 = vpop.f32.mrb[39].mxu0  ;;  %v1187_v48 = vmax.f32 %v1185_v30, %v1186_v44  ;;  %v1194_v31 = vmax.f32 %v1192_v50, %v1193_v35  ;;  %v1195_v42 = vsel %vm1098_vm2, %v1001_v28, -inf  ;;  %v852_v11 = vadd.f32 %v2851_v56, %v2701_v3 }
 0x125   :  { %v2952_v36 = vpop.f32.mrb[39].mxu1  ;;  %v1399_v14 = vsel %vm1098_vm2, %v1063_v62, -inf  ;;  %v855_v18 = vadd.f32 %v2864_v17, %v2701_v3  ;;  %v596_v27 = vadd.f32 %v2886_v55, %v2701_v3  ;;  %v1520_v24 = vpack.c.bf16 %v1176_v40, %v1176_v40 }
 0x126   :  { %v1188_v23 = vrot.slane %v1187_v48, 1  ;;  %v1196_v25 = vmax.f32 %v1194_v31, %v1195_v42  ;;  %v1400_v30 = vmax.f32 %v1398_v54, %v1399_v14  ;;  %v3003_v33 = vmax.f32 %v2890_v58, %v1379_v22 }
 0x127   :  { %v1403_v28 = vsel %vm1098_vm2, %v1065_v43, -inf  ;;  %v1066_v34 = vmax.f32 %v844_v41, 0.0  ;;  %v3006_v44 = vmax.f32 %v1391_v4, %v1392_v63  ;;  %v1068_v50 = vmax.f32 %v852_v11, 0.0 }
 0x128   :  { %3460 = vst [vmem:[#allocation11_spill] sm:$0xff] %v3003_v33  ;;  %v1189_v37 = vmax.f32 %v1187_v48, %v1188_v23  ;;  %v1197_v56 = vrot.slane %v1196_v25, 4  ;;  %v1402_v35 = vmax.f32 %v1400_v30, %v1401_v15  ;;  %v1069_v17 = vmax.f32 %v855_v18, 0.0 }
 0x129   :  { %v2970_v7 = vpop.f32.mrb[40].mxu0  ;;  %3461 = vst [vmem:[#allocation12_spill] sm:$0xff] %v3006_v44  ;;  %v847_v54 = vadd.f32 %v2701_v3, %v2868_v51  ;;  %v588_v55 = vadd.f32 %v2701_v3, %v2894_v13  ;;  %v3016_v22 = vunpack.c.l.b16 %v1519_v16  ;;  %v1004_v4 = vmax.f32 %v596_v27, 0.0 }
 0x12a   :  { %v2972_v39 = vpop.f32.mrb[40].mxu1  ;;  %v2978_v38 = vpop.f32.mrb[41].mxu0  ;;  %v1198_v43 = vmax.f32 %v1196_v25, %v1197_v56  ;;  %v1404_v62 = vmax.f32 %v1402_v35, %v1403_v28  ;;  %v1521_v63 = vpack.c.bf16 %v1189_v37, %v1189_v37  ;;  %v1411_v15 = vsel %vm1098_vm2, %v1066_v34, -inf }
 0x12b   :  { %v2980_v10 = vpop.f32.mrb[41].mxu1  ;;  %v2985_v1 = vpop.f32.mrb[42].mxu0  ;;  %3462 = vst [vmem:[#allocation13_spill] sm:$0xff] %v3016_v22  ;;  %v1067_v51 = vmax.f32 %v847_v54, 0.0  ;;  %v1002_v31 = vmax.f32 %v588_v55, 0.0  ;;  %v3027_v14 = vunpack.c.l.b16 %v1520_v24  ;;  %v868_v11 = vadd.f32 %v2888_v52, %v2701_v3 }
 0x12c   :  { %v2987_v6 = vpop.f32.mrb[42].mxu1  ;;  %v2990_v8 = vpop.f32.mrb[43].mxu0  ;;  %v599_v18 = vadd.f32 %v2902_v2, %v2701_v3  ;;  %v1414_v27 = vsel %vm1098_vm2, %v1068_v50, -inf  ;;  %v1416_v28 = vsel %vm1098_vm2, %v1069_v17, -inf  ;;  %v1199_v34 = vrot.slane %v1198_v43, 2 }
 0x12d   :  { %v2992_v12 = vpop.f32.mrb[43].mxu1  ;;  %3463 = vst [vmem:[#allocation14_spill] sm:$0xff] %v3027_v14  ;;  %v1412_v24 = vsel %vm1098_vm2, %v1067_v51, -inf  ;;  %v1405_v37 = vrot.slane %v1404_v62, 4  ;;  %v1206_v56 = vsel %vm1098_vm2, %v1004_v4, -inf  ;;  %v3043_v35 = vunpack.c.l.b16 %v1521_v63 }
 0x12e   :  { %v1413_v52 = vmax.f32 %v1411_v15, %v1412_v24  ;;  %v1203_v2 = vsel %vm1098_vm2, %v1002_v31, -inf  ;;  %v860_v54 = vadd.f32 %v2701_v3, %v2896_v26  ;;  %v591_v55 = vadd.f32 %v2701_v3, %v2906_v9 }
 0x12f   :  { %3464 = vst [vmem:[#allocation15_spill] sm:$0xff] %v3043_v35  ;;  %v1072_v30 = vmax.f32 %v868_v11, 0.0  ;;  %v1005_v17 = vmax.f32 %v599_v18, 0.0  ;;  %v871_v51 = vadd.f32 %v2904_v20, %v2701_v3  ;;  %v863_v4 = vadd.f32 %v2701_v3, %v2908_v46 }
 0x130   :  { %v1415_v50 = vmax.f32 %v1413_v52, %v1414_v27  ;;  %v1070_v16 = vmax.f32 %v860_v54, 0.0  ;;  %v1003_v21 = vmax.f32 %v591_v55, 0.0  ;;  %v612_v63 = vadd.f32 %v2925_v45, %v2701_v3 }
 0x131   :  { %v3012_v40 = vpop.f32.mrb[44].mxu0  ;;  %v3060_v31 = vmax.f32 %v1198_v43, %v1199_v34  ;;  %v3062_v9 = vmax.f32 %v1404_v62, %v1405_v37  ;;  %v884_v20 = vadd.f32 %v2927_v47, %v2701_v3  ;;  %v1073_v24 = vmax.f32 %v871_v51, 0.0 }
 0x132   :  { %v3014_v58 = vpop.f32.mrb[44].mxu1  ;;  %v3018_v41 = vpop.f32.mrb[45].mxu0  ;;  %v1417_v11 = vmax.f32 %v1415_v50, %v1416_v28  ;;  %v1424_v46 = vsel %vm1098_vm2, %v1070_v16, -inf  ;;  %v1204_v45 = vsel %vm1098_vm2, %v1003_v21, -inf  ;;  %v1071_v52 = vmax.f32 %v863_v4, 0.0 }
 0x133   :  { %v3020_v48 = vpop.f32.mrb[45].mxu1  ;;  %v3023_v42 = vpop.f32.mrb[46].mxu0  ;;  %3465 = vst [vmem:[#allocation16_spill] sm:$0xff] %v3060_v31  ;;  %3466 = vst [vmem:[#allocation17_spill] sm:$0xff] %v3062_v9  ;;  %v1427_v28 = vsel %vm1098_vm2, %v1072_v30, -inf  ;;  %v1205_v34 = vmax.f32 %v1203_v2, %v1204_v45  ;;  %v1008_v37 = vmax.f32 %v612_v63, 0.0  ;;  %v604_v51 = vadd.f32 %v2701_v3, %v2931_v57 }
 0x134   :  { %v3025_v13 = vpop.f32.mrb[46].mxu1  ;;  %v3034_v23 = vpop.f32.mrb[47].mxu0  ;;  %v1418_v62 = vrot.slane %v1417_v11, 4  ;;  %v1208_v50 = vsel %vm1098_vm2, %v1005_v17, -inf  ;;  %v1425_v16 = vsel %vm1098_vm2, %v1071_v52, -inf  ;;  %v1076_v21 = vmax.f32 %v884_v20, 0.0 }
 0x135   :  { %v3036_v25 = vpop.f32.mrb[47].mxu1  ;;  %v1207_v44 = vmax.f32 %v1205_v34, %v1206_v56  ;;  %v1426_v29 = vmax.f32 %v1424_v46, %v1425_v16  ;;  %v1429_v30 = vsel %vm1098_vm2, %v1073_v24, -inf  ;;  %v1006_v2 = vmax.f32 %v604_v51, 0.0  ;;  %v3129_v9 = vld [vmem:[%s3437_s3] ss:$0 sm:$0xff] }
 0x136   :  { %v1419_v32 = vmax.f32 %v1417_v11, %v1418_v62  ;;  %v876_v63 = vadd.f32 %v2701_v3, %v2933_v60  ;;  %v615_v17 = vadd.f32 %v2942_v0, %v2701_v3  ;;  %v1219_v33 = vsel %vm1098_vm2, %v1008_v37, -inf }
 0x137   :  { %v1209_v52 = vmax.f32 %v1207_v44, %v1208_v50  ;;  %v1428_v20 = vmax.f32 %v1426_v29, %v1427_v28  ;;  %v3093_v57 = vsel %vm1098_vm2, %v1076_v21, -inf  ;;  %v887_v46 = vadd.f32 %v2944_v53, %v2701_v3 }
 0x138   :  { %v1420_v45 = vrot.slane %v1419_v32, 2  ;;  %v1074_v11 = vmax.f32 %v876_v63, 0.0  ;;  %v1009_v56 = vmax.f32 %v615_v17, 0.0  ;;  %v1216_v44 = vsel %vm1098_vm2, %v1006_v2, -inf }
 0x139   :  { %v3056_v15 = vpop.f32.mrb[48].mxu0  ;;  %v1210_v34 = vrot.slane %v1209_v52, 4  ;;  %v1430_v0 = vmax.f32 %v1428_v20, %v1429_v30  ;;  %v1077_v16 = vmax.f32 %v887_v46, 0.0  ;;  %v607_v53 = vadd.f32 %v2701_v3, %v2950_v5 }
 0x13a   :  { %v3058_v26 = vpop.f32.mrb[48].mxu1  ;;  %v3066_v18 = vpop.f32.mrb[49].mxu0  ;;  %v1421_v60 = vmax.f32 %v1419_v32, %v1420_v45  ;;  %v1437_v37 = vsel %vm1098_vm2, %v1074_v11, -inf  ;;  %v1221_v50 = vsel %vm1098_vm2, %v1009_v56, -inf  ;;  %v879_v2 = vadd.f32 %v2701_v3, %v2952_v36 }
 0x13b   :  { %v3068_v27 = vpop.f32.mrb[49].mxu1  ;;  %v3072_v54 = vpop.f32.mrb[50].mxu0  ;;  %v1211_v30 = vmax.f32 %v1209_v52, %v1210_v34  ;;  %v1431_v63 = vrot.slane %v1430_v0, 4  ;;  %v1442_v20 = vsel %vm1098_vm2, %v1077_v16, -inf  ;;  %v1007_v11 = vmax.f32 %v607_v53, 0.0 }
 0x13c   :  { %v3074_v43 = vpop.f32.mrb[50].mxu1  ;;  %v3077_v47 = vpop.f32.mrb[51].mxu0  ;;  %v1422_v32 = vrot.slane %v1421_v60, 1  ;;  %v628_v5 = vadd.f32 %v2970_v7, %v2701_v3  ;;  %v900_v56 = vadd.f32 %v2972_v39, %v2701_v3  ;;  %v1075_v34 = vmax.f32 %v879_v2, 0.0 }
 0x13d   :  { %v3079_v55 = vpop.f32.mrb[51].mxu1  ;;  %v1212_v4 = vrot.slane %v1211_v30, 2  ;;  %v1432_v52 = vmax.f32 %v1430_v0, %v1431_v63  ;;  %v1217_v61 = vsel %vm1098_vm2, %v1007_v11, -inf  ;;  %v620_v16 = vadd.f32 %v3129_v9, %v2978_v38 }
 0x13e   :  { %v1423_v46 = vmax.f32 %v1421_v60, %v1422_v32  ;;  %v1012_v36 = vmax.f32 %v628_v5, 0.0  ;;  %v1080_v49 = vmax.f32 %v900_v56, 0.0  ;;  %v1218_v3 = vmax.f32 %v1216_v44, %v1217_v61 }
 0x13f   :  { %v1213_v53 = vmax.f32 %v1211_v30, %v1212_v4  ;;  %v1433_v35 = vrot.slane %v1432_v52, 2  ;;  %v1438_v39 = vsel %vm1098_vm2, %v1075_v34, -inf  ;;  %v1010_v32 = vmax.f32 %v620_v16, 0.0 }
 0x140   :  { %v1539_v7 = vpack.c.bf16 %v1423_v46, %v1423_v46  ;;  %v1232_v60 = vsel %vm1098_vm2, %v1012_v36, -inf  ;;  %v3136_v0 = vsel %vm1098_vm2, %v1080_v49, -inf  ;;  %v1220_v38 = vmax.f32 %v1218_v3, %v1219_v33 }
 0x141   :  { %v3097_v24 = vpop.f32.mrb[52].mxu0  ;;  %v1214_v5 = vrot.slane %v1213_v53, 1  ;;  %v1434_v56 = vmax.f32 %v1432_v52, %v1433_v35  ;;  %v1439_v61 = vmax.f32 %v1437_v37, %v1438_v39  ;;  %v1229_v44 = vsel %vm1098_vm2, %v1010_v32, -inf }
 0x142   :  { %v3099_v62 = vpop.f32.mrb[52].mxu1  ;;  %v3102_v29 = vpop.f32.mrb[53].mxu0  ;;  %v1644_v11 = vunpack.c.l.b16 %v1539_v7  ;;  %v892_v49 = vadd.f32 %v3129_v9, %v2980_v10  ;;  %v631_v30 = vadd.f32 %v3129_v9, %v2985_v1  ;;  %v1222_v33 = vmax.f32 %v1220_v38, %v1221_v50 }
 0x143   :  { %v3104_v28 = vpop.f32.mrb[53].mxu1  ;;  %v3110_v21 = vpop.f32.mrb[54].mxu0  ;;  %v1215_v16 = vmax.f32 %v1213_v53, %v1214_v5  ;;  %v1435_v35 = vrot.slane %v1434_v56, 1  ;;  %v903_v52 = vadd.f32 %v3129_v9, %v2987_v6  ;;  %v1441_v3 = vmax.f32 %v1439_v61, %v3093_v57 }
 0x144   :  { %v3112_v51 = vpop.f32.mrb[54].mxu1  ;;  %v3116_v17 = vpop.f32.mrb[55].mxu0  ;;  %v1078_v10 = vmax.f32 %v892_v49, 0.0  ;;  %v1013_v39 = vmax.f32 %v631_v30, 0.0  ;;  %v623_v1 = vadd.f32 %v3129_v9, %v2990_v8  ;;  %v1223_v22 = vrot.slane %v1222_v33, 4 }
 0x145   :  { %v3118_v45 = vpop.f32.mrb[55].mxu1  ;;  %v1523_v32 = vpack.c.bf16 %v1215_v16, %v1215_v16  ;;  %v1436_v14 = vmax.f32 %v1434_v56, %v1435_v35  ;;  %v1081_v53 = vmax.f32 %v903_v52, 0.0  ;;  %v1443_v5 = vmax.f32 %v1441_v3, %v1442_v20 }
 0x146   :  { %v1450_v50 = vsel %vm1098_vm2, %v1078_v10, -inf  ;;  %v1234_v6 = vsel %vm1098_vm2, %v1013_v39, -inf  ;;  %v1011_v38 = vmax.f32 %v623_v1, 0.0  ;;  %v1224_v31 = vmax.f32 %v1222_v33, %v1223_v22 }
 0x147   :  { %v3166_v59 = vunpack.c.l.b16 %v1523_v32  ;;  %v1540_v19 = vpack.c.bf16 %v1436_v14, %v1436_v14  ;;  %v1455_v57 = vsel %vm1098_vm2, %v1081_v53, -inf  ;;  %v1444_v61 = vrot.slane %v1443_v5, 4 }
 0x148   :  { %v1230_v49 = vsel %vm1098_vm2, %v1011_v38, -inf  ;;  %v895_v8 = vadd.f32 %v3129_v9, %v2992_v12  ;;  %v644_v20 = vadd.f32 %v3129_v9, %v3012_v40  ;;  %v1225_v16 = vrot.slane %v1224_v31, 2 }
 0x149   :  { %v3138_v63 = vpop.f32.mrb[56].mxu0  ;;  %v1645_v30 = vunpack.c.l.b16 %v1540_v19  ;;  %v1231_v35 = vmax.f32 %v1229_v44, %v1230_v49  ;;  %v916_v14 = vadd.f32 %v3129_v9, %v3014_v58  ;;  %v1445_v33 = vmax.f32 %v1443_v5, %v1444_v61 }
 0x14a   :  { %v3140_v2 = vpop.f32.mrb[56].mxu1  ;;  %v3142_v46 = vpop.f32.mrb[57].mxu0  ;;  %v1079_v52 = vmax.f32 %v895_v8, 0.0  ;;  %v1016_v3 = vmax.f32 %v644_v20, 0.0  ;;  %v636_v10 = vadd.f32 %v3129_v9, %v3018_v41  ;;  %v1226_v39 = vmax.f32 %v1224_v31, %v1225_v16 }
 0x14b   :  { %v3144_v4 = vpop.f32.mrb[57].mxu1  ;;  %v3151_v34 = vpop.f32.mrb[58].mxu0  ;;  %v1680_v40 = vsel %vm1652_vm3, %v1645_v30, %v1644_v11  ;;  %v1233_v1 = vmax.f32 %v1231_v35, %v1232_v60  ;;  %v1084_v19 = vmax.f32 %v916_v14, 0.0  ;;  %v1446_v44 = vrot.slane %v1445_v33, 2 }
 0x14c   :  { %v3153_v36 = vpop.f32.mrb[58].mxu1  ;;  %v3157_v7 = vpop.f32.mrb[59].mxu0  ;;  %v1451_v58 = vsel %vm1098_vm2, %v1079_v52, -inf  ;;  %v1245_v53 = vsel %vm1098_vm2, %v1016_v3, -inf  ;;  %v1014_v5 = vmax.f32 %v636_v10, 0.0  ;;  %v1227_v38 = vrot.slane %v1226_v39, 1 }
 0x14d   :  { %v3159_v37 = vpop.f32.mrb[59].mxu1  ;;  %v1235_v61 = vmax.f32 %v1233_v1, %v1234_v6  ;;  %v1452_v49 = vmax.f32 %v1450_v50, %v1451_v58  ;;  %v1466_v41 = vsel %vm1098_vm2, %v1084_v19, -inf  ;;  %v1447_v8 = vmax.f32 %v1445_v33, %v1446_v44 }
 0x14e   :  { %v1242_v20 = vsel %vm1098_vm2, %v1014_v5, -inf  ;;  %v908_v31 = vadd.f32 %v3129_v9, %v3020_v48  ;;  %v647_v60 = vadd.f32 %v3129_v9, %v3023_v42  ;;  %v1228_v11 = vmax.f32 %v1226_v39, %v1227_v38 }
 0x14f   :  { %v1236_v30 = vrot.slane %v1235_v61, 4  ;;  %v1454_v16 = vmax.f32 %v1452_v49, %v3136_v0  ;;  %v919_v35 = vadd.f32 %v3129_v9, %v3025_v13  ;;  %v1448_v6 = vrot.slane %v1447_v8, 1 }
 0x150   :  { %v1082_v50 = vmax.f32 %v908_v31, 0.0  ;;  %v1017_v14 = vmax.f32 %v647_v60, 0.0  ;;  %v639_v33 = vadd.f32 %v3129_v9, %v3034_v23  ;;  %v1524_v3 = vpack.c.bf16 %v1228_v11, %v1228_v11 }
 0x151   :  { %v3174_v56 = vpop.f32.mrb[60].mxu0  ;;  %v1237_v48 = vmax.f32 %v1235_v61, %v1236_v30  ;;  %v1456_v10 = vmax.f32 %v1454_v16, %v1455_v57  ;;  %v1085_v1 = vmax.f32 %v919_v35, 0.0  ;;  %v1449_v39 = vmax.f32 %v1447_v8, %v1448_v6 }
 0x152   :  { %v3178_v22 = vpop.f32.mrb[61].mxu0  ;;  %v1463_v0 = vsel %vm1098_vm2, %v1082_v50, -inf  ;;  %v1247_v19 = vsel %vm1098_vm2, %v1017_v14, -inf  ;;  %v1015_v13 = vmax.f32 %v639_v33, 0.0  ;;  %v1629_v58 = vunpack.c.l.b16 %v1524_v3 }
 0x153   :  { %v3182_v12 = vpop.f32.mrb[62].mxu0  ;;  %v1238_v5 = vrot.slane %v1237_v48, 2  ;;  %v1457_v38 = vrot.slane %v1456_v10, 4  ;;  %v1468_v23 = vsel %vm1098_vm2, %v1085_v1, -inf  ;;  %v1541_v61 = vpack.c.bf16 %v1449_v39, %v1449_v39 }
 0x154   :  { %v3185_v32 = vpop.f32.mrb[63].mxu0  ;;  %v1243_v57 = vsel %vm1098_vm2, %v1015_v13, -inf  ;;  %v911_v8 = vadd.f32 %v3129_v9, %v3036_v25  ;;  %v660_v31 = vadd.f32 %v3129_v9, %v3056_v15  ;;  %v1666_v60 = vsel %vm1652_vm3, %v1629_v58, %v3166_v59 }
 0x155   :  { %v1239_v11 = vmax.f32 %v1237_v48, %v1238_v5  ;;  %v1458_v30 = vmax.f32 %v1456_v10, %v1457_v38  ;;  %v1244_v16 = vmax.f32 %v1242_v20, %v1243_v57  ;;  %v1646_v35 = vunpack.c.l.b16 %v1541_v61 }
 0x156   :  { %v1083_v6 = vmax.f32 %v911_v8, 0.0  ;;  %v1020_v50 = vmax.f32 %v660_v31, 0.0  ;;  %v932_v14 = vadd.f32 %v3129_v9, %v3058_v26  ;;  %v652_v25 = vadd.f32 %v3129_v9, %v3066_v18 }
 0x157   :  { %v1240_v33 = vrot.slane %v1239_v11, 1  ;;  %v1459_v3 = vrot.slane %v1458_v30, 2  ;;  %v1246_v1 = vmax.f32 %v1244_v16, %v1245_v53  ;;  %v1681_v15 = vsel %vm1654_vm4, %v1646_v35, %v1680_v40 }
 0x158   :  { %v1464_v39 = vsel %vm1098_vm2, %v1083_v6, -inf  ;;  %v1258_v59 = vsel %vm1098_vm2, %v1020_v50, -inf  ;;  %v1088_v48 = vmax.f32 %v932_v14, 0.0  ;;  %v1018_v5 = vmax.f32 %v652_v25, 0.0 }
 0x159   :  { %v3200_v52 = vpop.f32.mrb[64].mxu0  ;;  %v1241_v20 = vmax.f32 %v1239_v11, %v1240_v33  ;;  %v1460_v10 = vmax.f32 %v1458_v30, %v1459_v3  ;;  %v1248_v13 = vmax.f32 %v1246_v1, %v1247_v19  ;;  %v1465_v58 = vmax.f32 %v1463_v0, %v1464_v39 }
 0x15a   :  { %v3202_v42 = vpop.f32.mrb[65].mxu0  ;;  %v1479_v26 = vsel %vm1098_vm2, %v1088_v48, -inf  ;;  %v924_v53 = vadd.f32 %v3129_v9, %v3068_v27  ;;  %v663_v18 = vadd.f32 %v3129_v9, %v3072_v54  ;;  %v1255_v8 = vsel %vm1098_vm2, %v1018_v5, -inf }
 0x15b   :  { %v3206_v44 = vpop.f32.mrb[66].mxu0  ;;  %v1525_v40 = vpack.c.bf16 %v1241_v20, %v1241_v20  ;;  %v1461_v38 = vrot.slane %v1460_v10, 1  ;;  %v1249_v61 = vrot.slane %v1248_v13, 4  ;;  %v1467_v57 = vmax.f32 %v1465_v58, %v1466_v41 }
 0x15c   :  { %v3209_v49 = vpop.f32.mrb[67].mxu0  ;;  %v1086_v31 = vmax.f32 %v924_v53, 0.0  ;;  %v1021_v11 = vmax.f32 %v663_v18, 0.0  ;;  %v935_v0 = vadd.f32 %v3129_v9, %v3074_v43  ;;  %v655_v50 = vadd.f32 %v3129_v9, %v3077_v47 }
 0x15d   :  { %v1630_v19 = vunpack.c.l.b16 %v1525_v40  ;;  %v1462_v30 = vmax.f32 %v1460_v10, %v1461_v38  ;;  %v1250_v16 = vmax.f32 %v1248_v13, %v1249_v61  ;;  %v1469_v35 = vmax.f32 %v1467_v57, %v1468_v23 }
 0x15e   :  { %v1476_v27 = vsel %vm1098_vm2, %v1086_v31, -inf  ;;  %v1260_v6 = vsel %vm1098_vm2, %v1021_v11, -inf  ;;  %v1089_v54 = vmax.f32 %v935_v0, 0.0  ;;  %v1019_v1 = vmax.f32 %v655_v50, 0.0 }
 0x15f   :  { %v3238_v41 = vsel %vm1654_vm4, %v1630_v19, %v1666_v60  ;;  %v1542_v14 = vpack.c.bf16 %v1462_v30, %v1462_v30  ;;  %v1251_v33 = vrot.slane %v1250_v16, 2  ;;  %v1470_v3 = vrot.slane %v1469_v35, 4 }
 0x160   :  { %v1481_v43 = vsel %vm1098_vm2, %v1089_v54, -inf  ;;  %v927_v23 = vadd.f32 %v3129_v9, %v3079_v55  ;;  %v676_v25 = vadd.f32 %v3129_v9, %v3097_v24  ;;  %v948_v47 = vadd.f32 %v3129_v9, %v3099_v62 }
 0x161   :  { %v1647_v39 = vunpack.c.l.b16 %v1542_v14  ;;  %v1252_v48 = vmax.f32 %v1250_v16, %v1251_v33  ;;  %v1471_v20 = vmax.f32 %v1469_v35, %v1470_v3  ;;  %v1256_v60 = vsel %vm1098_vm2, %v1019_v1, -inf }
 0x162   :  { %v1087_v10 = vmax.f32 %v927_v23, 0.0  ;;  %v1024_v13 = vmax.f32 %v676_v25, 0.0  ;;  %v668_v58 = vadd.f32 %v3129_v9, %v3102_v29  ;;  %v1257_v18 = vmax.f32 %v1255_v8, %v1256_v60 }
 0x163   :  { %v3251_v5 = vsel %vm1656_vm5, %v1647_v39, %v1681_v15  ;;  %v1253_v55 = vrot.slane %v1252_v48, 1  ;;  %v1472_v53 = vrot.slane %v1471_v20, 2  ;;  %v1092_v38 = vmax.f32 %v948_v47, 0.0 }
 0x164   :  { %v1477_v24 = vsel %vm1098_vm2, %v1087_v10, -inf  ;;  %v1271_v40 = vsel %vm1098_vm2, %v1024_v13, -inf  ;;  %v1022_v61 = vmax.f32 %v668_v58, 0.0  ;;  %v1259_v31 = vmax.f32 %v1257_v18, %v1258_v59 }
 0x165   :  { %v1254_v62 = vmax.f32 %v1252_v48, %v1253_v55  ;;  %v1473_v57 = vmax.f32 %v1471_v20, %v1472_v53  ;;  %v1478_v11 = vmax.f32 %v1476_v27, %v1477_v24  ;;  %v1492_v0 = vsel %vm1098_vm2, %v1092_v38, -inf }
 0x166   :  { %v1268_v29 = vsel %vm1098_vm2, %v1022_v61, -inf  ;;  %v940_v15 = vadd.f32 %v3129_v9, %v3104_v28  ;;  %v679_v8 = vadd.f32 %v3129_v9, %v3110_v21  ;;  %v1261_v16 = vmax.f32 %v1259_v31, %v1260_v6 }
 0x167   :  { %v1526_v19 = vpack.c.bf16 %v1254_v62, %v1254_v62  ;;  %v1474_v30 = vrot.slane %v1473_v57, 1  ;;  %v1480_v35 = vmax.f32 %v1478_v11, %v1479_v26  ;;  %v951_v59 = vadd.f32 %v3129_v9, %v3112_v51 }
 0x168   :  { %v1090_v54 = vmax.f32 %v940_v15, 0.0  ;;  %v1025_v50 = vmax.f32 %v679_v8, 0.0  ;;  %v671_v27 = vadd.f32 %v3129_v9, %v3116_v17  ;;  %v1262_v3 = vrot.slane %v1261_v16, 4 }
 0x169   :  { %v3265_v14 = vunpack.c.l.b16 %v1526_v19  ;;  %v1475_v33 = vmax.f32 %v1473_v57, %v1474_v30  ;;  %v1482_v28 = vmax.f32 %v1480_v35, %v1481_v43  ;;  %v1093_v23 = vmax.f32 %v951_v59, 0.0 }
 0x16a   :  { %v1489_v1 = vsel %vm1098_vm2, %v1090_v54, -inf  ;;  %v1273_v21 = vsel %vm1098_vm2, %v1025_v50, -inf  ;;  %v1023_v6 = vmax.f32 %v671_v27, 0.0  ;;  %v1263_v25 = vmax.f32 %v1261_v16, %v1262_v3 }
 0x16b   :  { %v1543_v26 = vpack.c.bf16 %v1475_v33, %v1475_v33  ;;  %v1483_v39 = vrot.slane %v1482_v28, 4  ;;  %v943_v51 = vadd.f32 %v3129_v9, %v3118_v45  ;;  %v1494_v48 = vsel %vm1098_vm2, %v1093_v23, -inf }
 0x16c   :  { %v1269_v17 = vsel %vm1098_vm2, %v1023_v6, -inf  ;;  %v692_v20 = vadd.f32 %v3129_v9, %v3138_v63  ;;  %v964_v43 = vadd.f32 %v3129_v9, %v3140_v2  ;;  %v1264_v60 = vrot.slane %v1263_v25, 2 }
 0x16d   :  { %v3277_v47 = vunpack.c.l.b16 %v1543_v26  ;;  %v1484_v10 = vmax.f32 %v1482_v28, %v1483_v39  ;;  %v1270_v13 = vmax.f32 %v1268_v29, %v1269_v17  ;;  %v1091_v58 = vmax.f32 %v943_v51, 0.0 }
 0x16e   :  { %v1028_v55 = vmax.f32 %v692_v20, 0.0  ;;  %v1096_v53 = vmax.f32 %v964_v43, 0.0  ;;  %v684_v45 = vadd.f32 %v3129_v9, %v3142_v46  ;;  %v1265_v18 = vmax.f32 %v1263_v25, %v1264_v60 }
 0x16f   :  { %v1485_v24 = vrot.slane %v1484_v10, 2  ;;  %v1272_v38 = vmax.f32 %v1270_v13, %v1271_v40  ;;  %v956_v63 = vadd.f32 %v3129_v9, %v3144_v4  ;;  %v1490_v61 = vsel %vm1098_vm2, %v1091_v58, -inf }
 0x170   :  { %v1284_v2 = vsel %vm1098_vm2, %v1028_v55, -inf  ;;  %v1505_v62 = vsel %vm1098_vm2, %v1096_v53, -inf  ;;  %v1026_v57 = vmax.f32 %v684_v45, 0.0  ;;  %v1266_v31 = vrot.slane %v1265_v18, 1 }
 0x171   :  { %v1486_v11 = vmax.f32 %v1484_v10, %v1485_v24  ;;  %v1274_v29 = vmax.f32 %v1272_v38, %v1273_v21  ;;  %v1491_v15 = vmax.f32 %v1489_v1, %v1490_v61  ;;  %v1094_v46 = vmax.f32 %v956_v63, 0.0 }
 0x172   :  { %v1281_v8 = vsel %vm1098_vm2, %v1026_v57, -inf  ;;  %v695_v40 = vadd.f32 %v3129_v9, %v3151_v34  ;;  %v967_v4 = vadd.f32 %v3129_v9, %v3153_v36  ;;  %v1267_v19 = vmax.f32 %v1265_v18, %v1266_v31 }
 0x173   :  { %v1487_v30 = vrot.slane %v1486_v11, 1  ;;  %v1275_v16 = vrot.slane %v1274_v29, 4  ;;  %v1493_v35 = vmax.f32 %v1491_v15, %v1492_v0  ;;  %v1502_v54 = vsel %vm1098_vm2, %v1094_v46, -inf }
 0x174   :  { %v1029_v50 = vmax.f32 %v695_v40, 0.0  ;;  %v1097_v59 = vmax.f32 %v967_v4, 0.0  ;;  %v687_v27 = vadd.f32 %v3129_v9, %v3157_v7  ;;  %v1527_v33 = vpack.c.bf16 %v1267_v19, %v1267_v19 }
 0x175   :  { %v1488_v3 = vmax.f32 %v1486_v11, %v1487_v30  ;;  %v1276_v28 = vmax.f32 %v1274_v29, %v1275_v16  ;;  %v1495_v1 = vmax.f32 %v1493_v35, %v1494_v48  ;;  %v959_v23 = vadd.f32 %v3129_v9, %v3159_v37 }
 0x176   :  { %v1286_v34 = vsel %vm1098_vm2, %v1029_v50, -inf  ;;  %v1507_v21 = vsel %vm1098_vm2, %v1097_v59, -inf  ;;  %v1027_v36 = vmax.f32 %v687_v27, 0.0  ;;  %v3298_v0 = vunpack.c.l.b16 %v1527_v33 }
 0x177   :  { %v1544_v6 = vpack.c.bf16 %v1488_v3, %v1488_v3  ;;  %v1277_v26 = vrot.slane %v1276_v28, 2  ;;  %v1496_v25 = vrot.slane %v1495_v1, 4  ;;  %v1095_v7 = vmax.f32 %v959_v23, 0.0  ;;  %v3469_v23 = vld [vmem:[#allocation5_spill] sm:$0xff] }
 0x178   :  { %v1282_v39 = vsel %vm1098_vm2, %v1027_v36, -inf  ;;  %v708_v51 = vadd.f32 %v3129_v9, %v3174_v56  ;;  %v700_v48 = vadd.f32 %v3129_v9, %v3178_v22  ;;  %v711_v58 = vadd.f32 %v3129_v9, %v3182_v12 }
 0x179   :  { %v3305_v17 = vunpack.c.l.b16 %v1544_v6  ;;  %v1278_v20 = vmax.f32 %v1276_v28, %v1277_v26  ;;  %v1497_v43 = vmax.f32 %v1495_v1, %v1496_v25  ;;  %v1283_v60 = vmax.f32 %v1281_v8, %v1282_v39  ;;  %v3470_v6 = vld [vmem:[#allocation9_spill] sm:$0xff] }
 0x17a   :  { %v1503_v37 = vsel %vm1098_vm2, %v1095_v7, -inf  ;;  %v1032_v10 = vmax.f32 %v708_v51, 0.0  ;;  %v1030_v13 = vmax.f32 %v700_v48, 0.0  ;;  %v1033_v24 = vmax.f32 %v711_v58, 0.0 }
 0x17b   :  { %v1279_v55 = vrot.slane %v1278_v20, 1  ;;  %v1498_v53 = vrot.slane %v1497_v43, 2  ;;  %v1285_v45 = vmax.f32 %v1283_v60, %v1284_v2  ;;  %v1504_v18 = vmax.f32 %v1502_v54, %v1503_v37  ;;  %v3471_v60 = vld [vmem:[#allocation13_spill] sm:$0xff] }
 0x17c   :  { %v1297_v56 = vsel %vm1098_vm2, %v1032_v10, -inf  ;;  %v1294_v22 = vsel %vm1098_vm2, %v1030_v13, -inf  ;;  %v703_v38 = vadd.f32 %v3129_v9, %v3185_v32  ;;  %v1299_v11 = vsel %vm1098_vm2, %v1033_v24, -inf  ;;  %v3473_v24 = vld [vmem:[#allocation15_spill] sm:$0xff] }
 0x17d   :  { %v1280_v63 = vmax.f32 %v1278_v20, %v1279_v55  ;;  %v1499_v61 = vmax.f32 %v1497_v43, %v1498_v53  ;;  %v1287_v57 = vmax.f32 %v1285_v45, %v1286_v34  ;;  %v1506_v31 = vmax.f32 %v1504_v18, %v1505_v62  ;;  %v3472_v55 = vld [vmem:[#allocation14_spill] sm:$0xff] }
 0x17e   :  { %v1031_v29 = vmax.f32 %v703_v38, 0.0  ;;  %v724_v12 = vadd.f32 %v3129_v9, %v3200_v52  ;;  %v716_v2 = vadd.f32 %v3129_v9, %v3202_v42  ;;  %v727_v62 = vadd.f32 %v3129_v9, %v3206_v44  ;;  %v3467_v44 = vld [vmem:[#allocation16_spill] sm:$0xff] }
 0x17f   :  { %v1528_v15 = vpack.c.bf16 %v1280_v63, %v1280_v63  ;;  %v1500_v8 = vrot.slane %v1499_v61, 1  ;;  %v1288_v46 = vrot.slane %v1287_v57, 4  ;;  %v1508_v40 = vmax.f32 %v1506_v31, %v1507_v21 }
 0x180   :  { %v1295_v4 = vsel %vm1098_vm2, %v1031_v29, -inf  ;;  %v1036_v32 = vmax.f32 %v724_v12, 0.0  ;;  %v1034_v19 = vmax.f32 %v716_v2, 0.0  ;;  %v1037_v59 = vmax.f32 %v727_v62, 0.0  ;;  %v3475_v62 = vld [vmem:[#allocation6_spill] sm:$0xff] }
 0x181   :  { %v1633_v30 = vunpack.c.l.b16 %v1528_v15  ;;  %v1501_v16 = vmax.f32 %v1499_v61, %v1500_v8  ;;  %v1289_v35 = vmax.f32 %v1287_v57, %v1288_v46  ;;  %v1509_v54 = vrot.slane %v1508_v40, 4 }
 0x182   :  { %v1296_v50 = vmax.f32 %v1294_v22, %v1295_v4  ;;  %v1310_v52 = vsel %vm1098_vm2, %v1036_v32, -inf  ;;  %v1307_v42 = vsel %vm1098_vm2, %v1034_v19, -inf  ;;  %v719_v28 = vadd.f32 %v3129_v9, %v3209_v49 }
 0x183   :  { %v1545_v27 = vpack.c.bf16 %v1501_v16, %v1501_v16  ;;  %v1290_v33 = vrot.slane %v1289_v35, 2  ;;  %v1510_v3 = vmax.f32 %v1508_v40, %v1509_v54  ;;  %v1312_v34 = vsel %vm1098_vm2, %v1037_v59, -inf  ;;  %v3474_v40 = vld [vmem:[#allocation17_spill] sm:$0xff]  ;;  %v3476_v16 = vld [vmem:[#allocation10_spill] sm:$0xff] }
 0x184   :  { %v1298_v1 = vmax.f32 %v1296_v50, %v1297_v56  ;;  %v3468_v21 = vrot.slane %v3467_v44, 1  ;;  %v1657_v26 = vsel %vm1656_vm5, %v3470_v6, %v3469_v23  ;;  %v1035_v51 = vmax.f32 %v719_v28, 0.0  ;;  %v3480_v28 = vld [vmem:[#allocation7_spill] sm:$0xff]  ;;  %v3483_v23 = vld [vmem:[#allocation8_spill] sm:$0xff] }
 0x185   :  { %v1650_v25 = vunpack.c.l.b16 %v1545_v27  ;;  %v1291_v39 = vmax.f32 %v1289_v35, %v1290_v33  ;;  %v1511_v7 = vrot.slane %v1510_v3, 2  ;;  %v1659_v37 = vsel %vm1658_vm6, %v3471_v60, %v1657_v26 }
 0x186   :  { %v1202_v36 = vmax.f32 %v3467_v44, %v3468_v21  ;;  %v1300_v48 = vmax.f32 %v1298_v1, %v1299_v11  ;;  %v1308_v43 = vsel %vm1098_vm2, %v1035_v51, -inf  ;;  %v1661_v53 = vsel %vm1660_vm7, %v3472_v55, %v1659_v37 }
 0x187   :  { %v1292_v9 = vrot.slane %v1291_v39, 1  ;;  %v1512_v49 = vmax.f32 %v1510_v3, %v1511_v7  ;;  %v1309_v13 = vmax.f32 %v1307_v42, %v1308_v43  ;;  %v1663_v38 = vsel %vm1662_vm8, %v3473_v24, %v1661_v53  ;;  %v3379_v3 = vld [vmem:[%s3435_s1 + $0x18] sm:$0xff]  ;;  %v1556_v7 = vld [vmem:[%s3435_s1 + $0x8] sm:$0xff] }
 0x188   :  { %v1522_v20 = vpack.c.bf16 %v1202_v36, %v1202_v36  ;;  %v1301_v10 = vrot.slane %v1300_v48, 4  ;;  %v1668_v63 = vsel %vm1656_vm5, %v3265_v14, %v3238_v41  ;;  %v1683_v15 = vsel %vm1658_vm6, %v3277_v47, %v3251_v5  ;;  %v3355_v41 = vld [vmem:[%s3435_s1 + $0x10] sm:$0xff]  ;;  %v3360_v14 = vld [vmem:[%s3435_s1] sm:$0xff] }
 0x189   :  { %v1293_v45 = vmax.f32 %v1291_v39, %v1292_v9  ;;  %v1513_v18 = vrot.slane %v1512_v49, 1  ;;  %v1311_v22 = vmax.f32 %v1309_v13, %v1310_v52  ;;  %v1669_v11 = vsel %vm1658_vm6, %v3298_v0, %v1668_v63 }
 0x18a   :  { %v1627_v58 = vunpack.c.l.b16 %v1522_v20  ;;  %v1302_v56 = vmax.f32 %v1300_v48, %v1301_v10  ;;  %v1670_v2 = vsel %vm1660_vm7, %v1633_v30, %v1669_v11  ;;  %v1684_v46 = vsel %vm1660_vm7, %v3305_v17, %v1683_v15  ;;  %v3478_v17 = vld [vmem:[#allocation11_spill] sm:$0xff] }
 0x18b   :  { %v1529_v61 = vpack.c.bf16 %v1293_v45, %v1293_v45  ;;  %v1514_v57 = vmax.f32 %v1512_v49, %v1513_v18  ;;  %v1313_v12 = vmax.f32 %v1311_v22, %v1312_v34  ;;  %v1407_v4 = vrot.slane %v3474_v40, 2  ;;  %v3481_v34 = vld [vmem:[#allocation12_spill] sm:$0xff] }
 0x18c   :  { %v3344_v31 = vsel %vm1664_vm9, %v1627_v58, %v1663_v38  ;;  %v1303_v29 = vrot.slane %v1302_v56, 2  ;;  %v1685_v5 = vsel %vm1662_vm8, %v1650_v25, %v1684_v46  ;;  %v2200_v47 = vmov 0  }
 0x18d   :  { %v1634_v8 = vunpack.c.l.b16 %v1529_v61  ;;  %v1546_v0 = vpack.c.bf16 %v1514_v57, %v1514_v57  ;;  %v1314_v19 = vrot.slane %v1313_v12, 4  ;;  %2166 = vset.pattern.permute.xlu1 %v2200_v47  ;;  %2165 = vset.pattern.permute.xlu0 %v2200_v47  ;;  %v1331_v30 = vrot.slane %v3475_v62, 1 }
 0x18e   :  { %v1304_v32 = vmax.f32 %v1302_v56, %v1303_v29  ;;  %v3477_v35 = vrot.slane %v3476_v16, 2  ;;  %1572 = vperm.xlu1 %2166, %v3355_v41   ;;  %1562 = vperm.xlu0 %2165, %v3360_v14   ;;  %v3479_v42 = vrot.slane %v3478_v17, 2  ;;  %v1344_v1 = vrot.slane %v3480_v28, 1 }
 0x18f   :  { %v1651_v50 = vunpack.c.l.b16 %v1546_v0  ;;  %v1671_v52 = vsel %vm1662_vm8, %v1634_v8, %v1670_v2  ;;  %v1315_v33 = vmax.f32 %v1313_v12, %v1314_v19  ;;  %v3482_v44 = vrot.slane %v3481_v34, 2 }
 0x190   :  { %v1369_v54 = vmax.f32 %v3476_v16, %v3477_v35  ;;  %v1382_v59 = vmax.f32 %v3478_v17, %v3479_v42  ;;  %v1305_v27 = vrot.slane %v1304_v32, 1  ;;  %v1357_v6 = vrot.slane %v3483_v23, 1 }
 0x191   :  { %v1395_v21 = vmax.f32 %v3481_v34, %v3482_v44  ;;  %v3386_v36 = vsel %vm1664_vm9, %v1651_v50, %v1685_v5  ;;  %v1408_v26 = vmax.f32 %v3474_v40, %v1407_v4  ;;  %v1316_v25 = vrot.slane %v1315_v33, 2 }
 0x192   :  { %v1306_v39 = vmax.f32 %v1304_v32, %v1305_v27  ;;  %v1332_v51 = vmax.f32 %v3475_v62, %v1331_v30  ;;  %v1370_v48 = vrot.slane %v1369_v54, 1  ;;  %1577 = vperm.xlu1 %2166, %v3379_v3   ;;  %1567 = vperm.xlu0 %2165, %v1556_v7   ;;  %v1383_v20 = vrot.slane %v1382_v59, 1 }
 0x193   :  { %v1317_v9 = vmax.f32 %v1315_v33, %v1316_v25  ;;  %v1345_v43 = vmax.f32 %v3480_v28, %v1344_v1  ;;  %v1396_v60 = vrot.slane %v1395_v21, 1  ;;  %v1358_v37 = vmax.f32 %v3483_v23, %v1357_v6 }
 0x194   :  { %v1530_v49 = vpack.c.bf16 %v1306_v39, %v1306_v39  ;;  %v1409_v10 = vrot.slane %v1408_v26, 1  ;;  %v1532_v55 = vpack.c.bf16 %v1332_v51, %v1332_v51  ;;  %v1371_v53 = vmax.f32 %v1369_v54, %v1370_v48 }
 0x195   :  { %v1318_v13 = vrot.slane %v1317_v9, 1  ;;  %v2201_v45 = vmov 1   ;;  %v1384_v18 = vmax.f32 %v1382_v59, %v1383_v20  ;;  %v1533_v24 = vpack.c.bf16 %v1345_v43, %v1345_v43 }
 0x196   :  { %v1635_v58 = vunpack.c.l.b16 %v1530_v49  ;;  %2168 = vset.pattern.permute.xlu1 %v2201_v45  ;;  %2167 = vset.pattern.permute.xlu0 %v2201_v45  ;;  %v1397_v38 = vmax.f32 %v1395_v21, %v1396_v60  ;;  %v1534_v61 = vpack.c.bf16 %v1358_v37, %v1358_v37  ;;  %v1410_v57 = vmax.f32 %v1408_v26, %v1409_v10 }
 0x197   :  { %v1319_v56 = vmax.f32 %v1317_v9, %v1318_v13  ;;  %1773 = vperm.xlu1 %2168, %v1556_v7   ;;  %1769 = vperm.xlu0 %2167, %v3360_v14   ;;  %v1535_v29 = vpack.c.bf16 %v1371_v53, %v1371_v53  ;;  %v1637_v12 = vunpack.c.l.b16 %v1532_v55  ;;  %v1536_v2 = vpack.c.bf16 %v1384_v18, %v1384_v18 }
 0x198   :  { %v1672_v22 = vsel %vm1664_vm9, %v1635_v58, %v1671_v52  ;;  %v1638_v8 = vunpack.c.l.b16 %v1533_v24  ;;  %v1537_v0 = vpack.c.bf16 %v1397_v38, %v1397_v38  ;;  %v1639_v46 = vunpack.c.l.b16 %v1534_v61 }
 0x199   :  { %v1687_v63 = vpack.c.b16 %v1672_v22, %v3344_v31  ;;  %v1531_v11 = vpack.c.bf16 %v1319_v56, %v1319_v56  ;;  %v1538_v40 = vpack.c.bf16 %v1410_v57, %v1410_v57  ;;  %v1640_v31 = vunpack.c.l.b16 %v1535_v29 }
 0x19a   :  { %v1641_v19 = vunpack.c.l.b16 %v1536_v2  ;;  %v2202_v47 = vmov 2   ;;  %v1642_v62 = vunpack.c.l.b16 %v1537_v0  ;;  %v1580_v27 = vlaneseq }
 0x19b   :  { %2153 = vmatprep.mubr.msk.bf16.mxu1 %vm1098_vm2, %v1687_v63  ;;  %v1636_v15 = vunpack.c.l.b16 %v1531_v11  ;;  %1777 = vperm.xlu1 %2168, %v3355_v41   ;;  %v1643_v16 = vunpack.c.l.b16 %v1538_v40  ;;  %v1943_v63 = vld [vmem:[%s3440_s6] ss:$0 sm:$0xff]  ;;  %s2203_s6 = smov [#allocation2]  }
 0x19c   :  { %1781 = vperm.xlu0 %2167, %v3379_v3   ;;  %v1581_v1 = vshrl.u32 %v1580_v27, 7  ;;  %s1864_s13 = sshll.u32 %s2203_s6, 4  ;;  %s1865_s13 = int_to_ptr.vmem [resolvable:$true] %s1864_s13 }
 0x19d   :  { %v1673_v4 = vsel %vm1652_vm3, %v1637_v12, %v1636_v15  ;;  %s2176_s14 = scalar_lea.vmem %s1865_s13, 32  ;;  %p2181_p1 = scmp.lt.s32.totalorder %s1865_s13, %s1865_s13 }
 0x19e   :  { %v1674_v32 = vsel %vm1654_vm4, %v1638_v8, %v1673_v4  ;;  %v1582_v44 = vsub.s32 0, %v1581_v1  ;;  %v1814_v6 = vsub.s32 2, %v1581_v1  ;;  %p2177_p0 = scmp.ne.s32.totalorder %s1865_s13, %s2176_s14  ;;  %p2182_p2 = scmp.lt.s32.totalorder %s2176_s14, %s2176_s14 }
 0x19f   :  { %v1675_v5 = vsel %vm1656_vm5, %v1639_v46, %v1674_v32  ;;  %2169 = vset.pattern.permute.xlu1 %v2202_v47 }
 0x1a0   :  { %2170 = vset.pattern.permute.xlu0 %v2202_v47  ;;  %v1676_v30 = vsel %vm1658_vm6, %v1640_v31, %v1675_v5  ;;  %1797 = vperm.xlu1 %2169, %v3360_v14   ;;  %p2183_p3 = por %p2182_p2, %p2181_p1 }
 0x1a1   :  { %1801 = vperm.xlu0 %2170, %v1556_v7   ;;  %v1677_v35 = vsel %vm1660_vm7, %v1641_v19, %v1676_v30 }
 0x1a2   :  { %v1678_v54 = vsel %vm1662_vm8, %v1642_v62, %v1677_v35  ;;  %p2184_p4 = pnand %p2183_p3, %p2177_p0 }
 0x1a3   :  { %v1679_v50 = vsel %vm1664_vm9, %v1643_v16, %v1678_v54 }
 0x1a4   :  { %v1688_v52 = vpack.c.b16 %v3386_v36, %v1679_v50  ;;  %1805 = vperm.xlu1 %2169, %v3355_v41   ;;  %v1559_v36 = vld [vmem:[%s3438_s4] sm:$0x7]  ;;  %v1786_v41 = vsub.s32 1, %v1581_v1 }
 0x1a5   :  { %v1583_v23 = vrot.slane %v1559_v36, %v1582_v44  ;;  %v1815_v7 = vrot.slane %v1559_v36, %v1814_v6 }
 0x1a6   :  { %2154 = vmatmul.mubr.msk.bf16.vlgmr.msra.gmra.mrb[60].mxu1 %vm1098_vm2, %v1688_v52 }
 0x1a8   :  { %1809 = vperm.xlu1 %2169, %v3379_v3   ;;  %v1787_v3 = vrot.slane %v1559_v36, %v1786_v41 }
 0x20d   :  { %v1573_v17 = vpop.permute.xlu1 %1572  ;;  %v1563_v14 = vpop.permute.xlu0 %1562 }
 0x20e   :  { %v1586_v39 = vmul.f32 %v1583_v23, %v1573_v17  ;;  %v1584_v51 = vmul.f32 %v1583_v23, %v1563_v14 }
 0x211   :  { %v1578_v42 = vpop.permute.xlu1 %1577  ;;  %v1568_v28 = vpop.permute.xlu0 %1567 }
 0x212   :  { %v1587_v20 = vmul.f32 %v1583_v23, %v1578_v42  ;;  %v1585_v10 = vmul.f32 %v1583_v23, %v1568_v28 }
 0x216   :  { %v1774_v59 = vpop.permute.xlu1 %1773  ;;  %v1770_v21 = vpop.permute.xlu0 %1769 }
 0x217   :  { %v1789_v37 = vmul.f32 %v1787_v3, %v1774_v59  ;;  %v1788_v13 = vmul.f32 %v1787_v3, %v1770_v21 }
 0x21a   :  { %v1778_v33 = vpop.permute.xlu1 %1777 }
 0x21b   :  { %v1782_v25 = vpop.permute.xlu0 %1781  ;;  %v1790_v9 = vmul.f32 %v1787_v3, %v1778_v33 }
 0x21c   :  { %v1791_v18 = vmul.f32 %v1787_v3, %v1782_v25 }
 0x21f   :  { %v1798_v34 = vpop.permute.xlu1 %1797 }
 0x220   :  { %v1802_v60 = vpop.permute.xlu0 %1801  ;;  %v1816_v38 = vmul.f32 %v1815_v7, %v1798_v34 }
 0x221   :  { %v1817_v11 = vmul.f32 %v1815_v7, %v1802_v60 }
 0x223   :  { %v1806_v26 = vpop.permute.xlu1 %1805 }
 0x224   :  { %v1818_v45 = vmul.f32 %v1815_v7, %v1806_v26 }
 0x227   :  { %v1810_v58 = vpop.permute.xlu1 %1809 }
 0x228   :  { %v1819_v29 = vmul.f32 %v1815_v7, %v1810_v58 }
 0x279   :  { %v2155_v48 = vpop.f32.mrb[60].mxu1 }
 0x27a   :  { %v1762_v49 = vadd.f32 %v2155_v48, %v1586_v39  ;;  %v1753_v43 = vpop.f32.mrb[61].mxu1 }
 0x27b   :  { %v1754_v55 = vadd.f32 %v1753_v43, %v1584_v51  ;;  %v2156_v53 = vpop.f32.mrb[62].mxu1 }
 0x27c   :  { %v1794_v56 = vadd.f32 %v1790_v9, %v1762_v49  ;;  %v1765_v22 = vadd.f32 %v2156_v53, %v1587_v20  ;;  %v1756_v24 = vpop.f32.mrb[63].mxu1 }
 0x27d   :  { %v1792_v61 = vadd.f32 %v1788_v13, %v1754_v55  ;;  %v1757_v57 = vadd.f32 %v1756_v24, %v1585_v10 }
 0x27e   :  { %v1822_v12 = vadd.f32 %v1818_v45, %v1794_v56  ;;  %v1795_v2 = vadd.f32 %v1791_v18, %v1765_v22 }
 0x27f   :  { %v1820_v15 = vadd.f32 %v1816_v38, %v1792_v61  ;;  %v1793_v8 = vadd.f32 %v1789_v37, %v1757_v57 }
 0x280   :  { %v1833_v0 = vadd.f32 %v1943_v63, %v1822_v12  ;;  %v1823_v46 = vadd.f32 %v1819_v29, %v1795_v2 }
 0x281   :  { %v1831_v40 = vadd.f32 %v1943_v63, %v1820_v15  ;;  %v1821_v4 = vadd.f32 %v1817_v11, %v1793_v8 }
 0x282   :  { %v1834_v31 = vadd.f32 %v1943_v63, %v1823_v46  ;;  %v1837_v19 = vmax.f32 %v1833_v0, 0.0 }
 0x283   :  { %v1832_v32 = vadd.f32 %v1943_v63, %v1821_v4  ;;  %v1835_v47 = vmax.f32 %v1831_v40, 0.0 }
 0x284   :  { %v1838_v5 = vmax.f32 %v1834_v31, 0.0 }
 0x285   :  { %v1836_v62 = vmax.f32 %v1832_v32, 0.0 }
 0x286   :  { %v1846_v30 = vmax.f32 %v1837_v19, %v1838_v5 }
 0x287   :  { %v1839_v16 = vmax.f32 %v1835_v47, %v1836_v62 }
 0x288   :  { %v1847_v35 = vrot.slane %v1846_v30, 4 }
 0x289   :  { %v1840_v54 = vrot.slane %v1839_v16, 4 }
 0x28a   :  { %v1848_v50 = vmax.f32 %v1846_v30, %v1847_v35 }
 0x28b   :  { %v1841_v52 = vmax.f32 %v1839_v16, %v1840_v54 }
 0x28c   :  { %v1849_v17 = vrot.slane %v1848_v50, 2 }
 0x28d   :  { %v1842_v42 = vrot.slane %v1841_v52, 2 }
 0x28e   :  { %v1850_v59 = vmax.f32 %v1848_v50, %v1849_v17 }
 0x28f   :  { %v1843_v14 = vmax.f32 %v1841_v52, %v1842_v42 }
 0x290   :  { %v1851_v27 = vrot.slane %v1850_v59, 1 }
 0x291   :  { %v1844_v33 = vrot.slane %v1843_v14, 1 }
 0x292   :  { %v1852_v28 = vmax.f32 %v1850_v59, %v1851_v27 }
 0x293   :  { %v1845_v1 = vmax.f32 %v1843_v14, %v1844_v33 }
 0x295   :  { %v1855_v34 = vsel %vm1652_vm3, %v1852_v28, %v1845_v1 }
 0x296   :  { %1857 = vst [vmem:[#allocation2] sm:$0x3] %v1855_v34 }
 0x297   :  { %2187 = shalt.err (!%p2184_p4)
}
 0x298   :  { %s2188_s17 = scalar_lea.hbm %s3441_s7, 32 }
 0x299   :  { %p2189_p5 = scmp.ne.s32.totalorder %s3441_s7, %s2188_s17  ;;  %p2192_p6 = scmp.lt.u32.totalorder %s2188_s17, %s3441_s7 }
 0x29b   :  { %p2194_p7 = pnand %p2192_p6, %p2189_p5 }
 0x29d   :  { %2197 = shalt.err (!%p2194_p7)
}
 0x29e   :  { %1867 = dma.vmem_to_hbm [thread:$0]  %s1865_s13, 32, %s3441_s7, [#allocation3]  }
 0x29f   :  { %2198 = dma.done.wait [#allocation3], 32  }
 0x2a0   :  { %2199 = vsyncadd [#allocation3], 4294967264 }
 0x2a1   :  { %1871 = vsyncpa [#allocation3], 1 }

</bundles_post_ra>
